<compile_context>
chip_gen: v6e
topology: v6e:2x2x1
jax: 0.10.0
libtpu: 0.0.40
codegen_flags: <defaults>
</compile_context>

<pallas_src>
import functools

import jax
import jax.numpy as jnp
from jax import lax
from jax.experimental import pallas as pl
from jax.experimental.pallas import tpu as pltpu

_BN_EPS = 1e-5  # nn.BatchNorm1d default eps (training-mode batch stats, affine=False)


def _round_up(x: int, m: int) -> int:
    return ((x + m - 1) // m) * m


# ---------------------------------------------------------------------------
# Fused kernel: raw Gram tile on the MXU + BN statistics + BN fold + loss
# partials.  Grid = (D/td, D/td, N/tn); k (the N axis) is the reduction axis.
# ---------------------------------------------------------------------------
def _bt_kernel(z1t_ref, z2_ref, out_ref,
               acc_ref, s1s_ref, s1q_ref, s2s_ref, s2q_ref, *,
               lambd, inv_n, eps, d_true, td, tn, resident, precision):
    # All grid queries at the top level (binding them inside a pl.when body was
    # the previous compile failure); only their values are captured below.
    i = pl.program_id(0)
    j = pl.program_id(1)
    k = pl.program_id(2)
    nk = pl.num_programs(2)

    @pl.when(k == 0)
    def _init():
        acc_ref[...] = jnp.zeros_like(acc_ref)
        s1s_ref[...] = jnp.zeros_like(s1s_ref)
        s1q_ref[...] = jnp.zeros_like(s1q_ref)
        s2s_ref[...] = jnp.zeros_like(s2s_ref)
        s2q_ref[...] = jnp.zeros_like(s2q_ref)

    # z1^T operand: either a VMEM-resident (td, n_pad) slab sliced per k step,
    # or a streamed (td, tn) tile (fallback when the slab would not fit VMEM).
    if resident:
        z1_blk = z1t_ref[:, pl.ds(k * tn, tn)]          # (td, tn)
    else:
        z1_blk = z1t_ref[...]                           # (td, tn)
    z2_blk = z2_ref[...]                                # (tn, td)

    # Raw (un-normalized) Gram tile on the MXU, f32 accumulation in VMEM.
    acc_ref[...] += jnp.dot(z1_blk, z2_blk,
                            preferred_element_type=jnp.float32,
                            precision=precision)

    # BatchNorm statistics fused into the same pass (reuses the tiles already
    # in VMEM; these VPU/XLU reductions hide under the MXU + DMA).
    z1f = z1_blk.astype(jnp.float32)
    s1s_ref[...] += jnp.sum(z1f, axis=1, keepdims=True)          # (td, 1)
    s1q_ref[...] += jnp.sum(z1f * z1f, axis=1, keepdims=True)
    z2f = z2_blk.astype(jnp.float32)
    s2s_ref[...] += jnp.sum(z2f, axis=0, keepdims=True)          # (1, td)
    s2q_ref[...] += jnp.sum(z2f * z2f, axis=0, keepdims=True)

    @pl.when(k == nk - 1)
    def _finalize():
        m1 = s1s_ref[...] * inv_n                                 # (td, 1)
        v1 = jnp.maximum(s1q_ref[...] * inv_n - m1 * m1, 0.0)     # clamp >= 0
        r1 = lax.rsqrt(v1 + eps)
        m2 = s2s_ref[...] * inv_n                                 # (1, td)
        v2 = jnp.maximum(s2q_ref[...] * inv_n - m2 * m2, 0.0)
        r2 = lax.rsqrt(v2 + eps)

        # BatchNorm folded in place into the accumulator (no extra (td,td) temp):
        #   c = diag(r1) @ (Z1^T Z2 / N - m1 m2^T) @ diag(r2)
        acc_ref[...] = (acc_ref[...] * inv_n - m1 * m2) * (r1 * r2)
        c = acc_ref[...]

        # loss = lambd * sum(c^2)  +  sum_diag[(c-1)^2 - lambd*c^2]
        partial = lambd * jnp.sum(c * c)
        row = lax.broadcasted_iota(jnp.int32, (td, td), 0) + i * td
        col = lax.broadcasted_iota(jnp.int32, (td, td), 1) + j * td
        diag = (row == col) & (row < d_true)       # padded diag entries masked
        partial += jnp.sum(jnp.where(diag, (c - 1.0) ** 2 - lambd * (c * c), 0.0))

        # One lane-aligned (8,128) slot per (i, j) tile -> i/j stay "parallel".
        r8 = lax.broadcasted_iota(jnp.int32, (8, 128), 0)
        c128 = lax.broadcasted_iota(jnp.int32, (8, 128), 1)
        out_ref[...] = jnp.where((r8 == 0) & (c128 == 0), partial, 0.0)


def barlow_twins_loss(z1: jax.Array, z2: jax.Array, lambd: float = 0.005, *,
                      td: int | None = None, tn: int | None = None,
                      gram_dtype=None, precision=None,
                      vmem_budget_bytes: int | None = None) -> jax.Array:
    """Barlow Twins loss: BatchNorm1d(affine=False, training stats) on both
    views, D x D cross-correlation / N, (diag-1)^2 + lambd * offdiag^2."""
    assert z1.shape == z2.shape and z1.ndim == 2
    n, d = z1.shape

    if gram_dtype is not None:
        # Throughput knob: bf16 operands halve HBM traffic and run the MXU at
        # native rate; BN statistics and Gram accumulation remain f32.
        z1 = z1.astype(gram_dtype)
        z2 = z2.astype(gram_dtype)
    itemsize = jnp.dtype(z1.dtype).itemsize

    # ----- tile selection under an explicit VMEM budget (conservative for the
    #       64 MiB/TensorCore of v7x; v5e/v6e have more headroom). -----
    if tn is None:
        tn = min(512, _round_up(n, 128))
    if td is None:
        td = min(512, _round_up(d, 128))
    n_pad = _round_up(n, tn)

    budget = vmem_budget_bytes if vmem_budget_bytes is not None else (36 << 20)

    def _usage(td_, slab_n_):
        return (2 * slab_n_ * td_ * itemsize      # z1^T slab (double buffered)
                + 2 * tn * td_ * itemsize         # z2 tile   (double buffered)
                + td_ * td_ * 4                   # f32 Gram accumulator
                + 4 * td_ * 4                     # stats scratch
                + 2 * 8 * 128 * 4                 # output tile
                + (4 << 20))                      # finalize temporaries slack

    while td > 128 and _usage(td, n_pad) > budget:
        td //= 2
    resident = _usage(td, n_pad) <= budget
    slab_n = n_pad if resident else tn            # z1^T block width along N

    d_pad = _round_up(d, td)
    gd = d_pad // td
    gn = n_pad // tn
    inv_n = 1.0 / float(n)

    # ----- pad to tile multiples (no-op when already aligned).  Zero padding
    #       is exact for the Gram / statistics; padded diagonal entries are
    #       masked in-kernel. -----
    # TODO(synk): mask the N remainder in-kernel instead of padding, to avoid
    # the extra HBM copy when N % tn != 0.
    if n_pad != n or d_pad != d:
        z1 = jnp.pad(z1, ((0, n_pad - n), (0, d_pad - d)))
        z2 = jnp.pad(z2, ((0, n_pad - n), (0, d_pad - d)))
    # Feature-major copy of z1 so the in-kernel matmul is a plain [M,K]@[K,N]
    # and the z1 statistics land directly in the (td,1) column layout the BN
    # fold needs (no in-kernel relayout).  Under jit, XLA fuses pad+transpose
    # into a single copy.
    z1t = jnp.swapaxes(z1, 0, 1)                  # (d_pad, n_pad)

    kernel = functools.partial(
        _bt_kernel, lambd=float(lambd), inv_n=inv_n, eps=_BN_EPS, d_true=d,
        td=td, tn=tn, resident=resident, precision=precision)

    if resident:
        z1t_spec = pl.BlockSpec((td, slab_n), lambda i, j, k: (i, 0))
    else:
        z1t_spec = pl.BlockSpec((td, slab_n), lambda i, j, k: (i, k))

    cost = pl.CostEstimate(
        flops=2 * n_pad * d_pad * d_pad,
        transcendentals=0,
        bytes_accessed=(d_pad * n_pad * itemsize * (1 if resident else gd)
                        + n_pad * d_pad * itemsize * gd
                        + gd * gd * 8 * 128 * 4),
    )

    vmem_limit = int(min(max(_usage(td, slab_n) * 4 // 3, 32 << 20), 48 << 20))

    partials = pl.pallas_call(
        kernel,
        out_shape=jax.ShapeDtypeStruct((gd * 8, gd * 128), jnp.float32),
        grid_spec=pltpu.PrefetchScalarGridSpec(
            num_scalar_prefetch=0,
            grid=(gd, gd, gn),
            in_specs=[
                z1t_spec,                                         # z1^T slab
                pl.BlockSpec((tn, td), lambda i, j, k: (k, j)),   # z2 tile
            ],
            out_specs=pl.BlockSpec((8, 128), lambda i, j, k: (i, j)),
            scratch_shapes=[
                pltpu.VMEM((td, td), jnp.float32),   # Gram accumulator
                pltpu.VMEM((td, 1), jnp.float32),    # sum(z1)   per feature
                pltpu.VMEM((td, 1), jnp.float32),    # sum(z1^2) per feature
                pltpu.VMEM((1, td), jnp.float32),    # sum(z2)   per feature
                pltpu.VMEM((1, td), jnp.float32),    # sum(z2^2) per feature
            ],
        ),
        compiler_params=pltpu.CompilerParams(
            dimension_semantics=("parallel", "parallel", "arbitrary"),
            vmem_limit_bytes=vmem_limit,
        ),
        cost_estimate=cost,
    )(z1t, z2)

    # Only element [0, 0] of each (8, 128) slot is non-zero; tiny reduction.
    return jnp.sum(partials)


def _reference(z1, z2, lambd=0.005):
    # Pure-JAX reference matching the PyTorch module (BN training-mode stats).
    def bn(z):
        m = jnp.mean(z, axis=0, keepdims=True)
        v = jnp.mean((z - m) ** 2, axis=0, keepdims=True)
        return (z - m) / jnp.sqrt(v + _BN_EPS)

    n = z1.shape[0]
    c = bn(z1).T @ bn(z2) / n
    on_diag = jnp.sum((jnp.diag(c) - 1.0) ** 2)
    off_diag = jnp.sum(c * c) - jnp.sum(jnp.diag(c) ** 2)
    return on_diag + lambd * off_diag


if __name__ == "__main__":
    # nn.BatchNorm1d(dim, affine=False) has no learnable parameters — inputs only.
    N, D = 8, 32  # small demo shapes (padded to hardware tiles internally)
    key = jax.random.PRNGKey(0)
    k1, k2 = jax.random.split(key)
    z1 = jax.random.normal(k1, (N, D), dtype=jnp.float32)
    z2 = jax.random.normal(k2, (N, D), dtype=jnp.float32)

    loss_fn = jax.jit(functools.partial(barlow_twins_loss, lambd=0.005))
    loss = jax.block_until_ready(loss_fn(z1, z2))

    ref = jax.block_until_ready(_reference(z1, z2, lambd=0.005))
    # Both sides run the MXU at default precision on real TPUs (bf16 passes for
    # f32 inputs), so the comparison uses a bf16-aware tolerance; any real bug
    # (masking / scaling / BN fold) shows up as >>5% error.
    assert jnp.allclose(loss, ref, rtol=5e-2, atol=5e-2), (loss, ref)

    print("KERNEL_OK")
</pallas_src>

<mosaic_0001>
module attributes {stable_mosaic.version = 11 : i64} {
  func.func @_bt_kernel(%arg0: i32, %arg1: i32, %arg2: i32, %arg3: memref<128x128xf32, #tpu.memory_space<vmem>>, %arg4: memref<128x128xf32, #tpu.memory_space<vmem>>, %arg5: memref<8x128xf32, #tpu.memory_space<vmem>>, %arg6: memref<128x128xf32, #tpu.memory_space<vmem>>, %arg7: memref<128x1xf32, #tpu.memory_space<vmem>>, %arg8: memref<128x1xf32, #tpu.memory_space<vmem>>, %arg9: memref<1x128xf32, #tpu.memory_space<vmem>>, %arg10: memref<1x128xf32, #tpu.memory_space<vmem>>) attributes {dimension_semantics = [#tpu.dimension_semantics<parallel>, #tpu.dimension_semantics<parallel>, #tpu.dimension_semantics<arbitrary>], iteration_bounds = array<i64: 1, 1, 1>, scalar_prefetch = 0 : i64, scratch_operands = 5 : i64, tpu.core_type = #tpu.core_type<tc>, window_params = [{transform_indices = @transform_0, window_bounds = array<i64: 128, 128>}, {transform_indices = @transform_1, window_bounds = array<i64: 128, 128>}, {transform_indices = @transform_2, window_bounds = array<i64: 8, 128>}]} {
    %c0_i32 = arith.constant 0 : i32
    %0 = arith.cmpi eq, %arg2, %c0_i32 : i32
    %1 = arith.extui %0 : i1 to i32
    %c0_i32_0 = arith.constant 0 : i32
    %2 = arith.cmpi ne, %1, %c0_i32_0 : i32
    scf.if %2 {
      %cst_29 = arith.constant 0.000000e+00 : f32
      %36 = vector.broadcast %cst_29 : f32 to vector<128x128xf32>
      %c0_30 = arith.constant 0 : index
      %c0_31 = arith.constant 0 : index
      %37 = vector.load %arg6[%c0_30, %c0_31] : memref<128x128xf32, #tpu.memory_space<vmem>>, vector<128x128xf32>
      tpu.vector_store %arg6[%c0_30, %c0_31], %36 {strides = array<i32>} : memref<128x128xf32, #tpu.memory_space<vmem>>, vector<128x128xf32>,
      %cst_32 = arith.constant 0.000000e+00 : f32
      %38 = vector.broadcast %cst_32 : f32 to vector<128x1xf32>
      %c0_33 = arith.constant 0 : index
      %c0_34 = arith.constant 0 : index
      %39 = vector.load %arg7[%c0_33, %c0_34] : memref<128x1xf32, #tpu.memory_space<vmem>>, vector<128x1xf32>
      tpu.vector_store %arg7[%c0_33, %c0_34], %38 {strides = array<i32>} : memref<128x1xf32, #tpu.memory_space<vmem>>, vector<128x1xf32>,
      %cst_35 = arith.constant 0.000000e+00 : f32
      %40 = vector.broadcast %cst_35 : f32 to vector<128x1xf32>
      %c0_36 = arith.constant 0 : index
      %c0_37 = arith.constant 0 : index
      %41 = vector.load %arg8[%c0_36, %c0_37] : memref<128x1xf32, #tpu.memory_space<vmem>>, vector<128x1xf32>
      tpu.vector_store %arg8[%c0_36, %c0_37], %40 {strides = array<i32>} : memref<128x1xf32, #tpu.memory_space<vmem>>, vector<128x1xf32>,
      %cst_38 = arith.constant 0.000000e+00 : f32
      %42 = vector.broadcast %cst_38 : f32 to vector<1x128xf32>
      %c0_39 = arith.constant 0 : index
      %c0_40 = arith.constant 0 : index
      %43 = vector.load %arg9[%c0_39, %c0_40] : memref<1x128xf32, #tpu.memory_space<vmem>>, vector<1x128xf32>
      tpu.vector_store %arg9[%c0_39, %c0_40], %42 {strides = array<i32>} : memref<1x128xf32, #tpu.memory_space<vmem>>, vector<1x128xf32>,
      %cst_41 = arith.constant 0.000000e+00 : f32
      %44 = vector.broadcast %cst_41 : f32 to vector<1x128xf32>
      %c0_42 = arith.constant 0 : index
      %c0_43 = arith.constant 0 : index
      %45 = vector.load %arg10[%c0_42, %c0_43] : memref<1x128xf32, #tpu.memory_space<vmem>>, vector<1x128xf32>
      tpu.vector_store %arg10[%c0_42, %c0_43], %44 {strides = array<i32>} : memref<1x128xf32, #tpu.memory_space<vmem>>, vector<1x128xf32>,
    } else {
    }
    %c128_i32 = arith.constant 128 : i32
    %3 = arith.muli %arg2, %c128_i32 : i32
    %c0 = arith.constant 0 : index
    %4 = arith.index_cast %3 : i32 to index
    %5 = vector.load %arg3[%c0, %4] : memref<128x128xf32, #tpu.memory_space<vmem>>, vector<128x128xf32>
    %c0_1 = arith.constant 0 : index
    %c0_2 = arith.constant 0 : index
    %6 = vector.load %arg4[%c0_1, %c0_2] : memref<128x128xf32, #tpu.memory_space<vmem>>, vector<128x128xf32>
    %c0_3 = arith.constant 0 : index
    %c0_4 = arith.constant 0 : index
    %7 = vector.load %arg6[%c0_3, %c0_4] : memref<128x128xf32, #tpu.memory_space<vmem>>, vector<128x128xf32>
    %cst = arith.constant dense<0.000000e+00> : vector<128x128xf32>
    %8 = tpu.matmul %5, %6, %cst {dimension_numbers = #tpu.dot_dimension_numbers<[1], [0], [0], [1], [0, 0, 1, 1], [], []>} : vector<128x128xf32>, vector<128x128xf32>, vector<128x128xf32> -> vector<128x128xf32>
    %9 = arith.addf %7, %8 : vector<128x128xf32>
    %c0_5 = arith.constant 0 : index
    %c0_6 = arith.constant 0 : index
    %10 = vector.load %arg6[%c0_5, %c0_6] : memref<128x128xf32, #tpu.memory_space<vmem>>, vector<128x128xf32>
    tpu.vector_store %arg6[%c0_5, %c0_6], %9 {strides = array<i32>} : memref<128x128xf32, #tpu.memory_space<vmem>>, vector<128x128xf32>,
    %c0_7 = arith.constant 0 : index
    %c0_8 = arith.constant 0 : index
    %11 = vector.load %arg7[%c0_7, %c0_8] : memref<128x1xf32, #tpu.memory_space<vmem>>, vector<128x1xf32>
    %cst_9 = arith.constant dense<0.000000e+00> : vector<128xf32>
    %12 = vector.multi_reduction <add>, %5, %cst_9 [1] : vector<128x128xf32> to vector<128xf32>
    %13 = vector.shape_cast %12 : vector<128xf32> to vector<128x1xf32>
    %14 = arith.addf %11, %13 : vector<128x1xf32>
    %c0_10 = arith.constant 0 : index
    %c0_11 = arith.constant 0 : index
    %15 = vector.load %arg7[%c0_10, %c0_11] : memref<128x1xf32, #tpu.memory_space<vmem>>, vector<128x1xf32>
    tpu.vector_store %arg7[%c0_10, %c0_11], %14 {strides = array<i32>} : memref<128x1xf32, #tpu.memory_space<vmem>>, vector<128x1xf32>,
    %c0_12 = arith.constant 0 : index
    %c0_13 = arith.constant 0 : index
    %16 = vector.load %arg8[%c0_12, %c0_13] : memref<128x1xf32, #tpu.memory_space<vmem>>, vector<128x1xf32>
    %17 = arith.mulf %5, %5 : vector<128x128xf32>
    %cst_14 = arith.constant dense<0.000000e+00> : vector<128xf32>
    %18 = vector.multi_reduction <add>, %17, %cst_14 [1] : vector<128x128xf32> to vector<128xf32>
    %19 = vector.shape_cast %18 : vector<128xf32> to vector<128x1xf32>
    %20 = arith.addf %16, %19 : vector<128x1xf32>
    %c0_15 = arith.constant 0 : index
    %c0_16 = arith.constant 0 : index
    %21 = vector.load %arg8[%c0_15, %c0_16] : memref<128x1xf32, #tpu.memory_space<vmem>>, vector<128x1xf32>
    tpu.vector_store %arg8[%c0_15, %c0_16], %20 {strides = array<i32>} : memref<128x1xf32, #tpu.memory_space<vmem>>, vector<128x1xf32>,
    %c0_17 = arith.constant 0 : index
    %c0_18 = arith.constant 0 : index
    %22 = vector.load %arg9[%c0_17, %c0_18] : memref<1x128xf32, #tpu.memory_space<vmem>>, vector<1x128xf32>
    %cst_19 = arith.constant dense<0.000000e+00> : vector<128xf32>
    %23 = vector.multi_reduction <add>, %6, %cst_19 [0] : vector<128x128xf32> to vector<128xf32>
    %24 = vector.shape_cast %23 : vector<128xf32> to vector<1x128xf32>
    %25 = arith.addf %22, %24 : vector<1x128xf32>
    %c0_20 = arith.constant 0 : index
    %c0_21 = arith.constant 0 : index
    %26 = vector.load %arg9[%c0_20, %c0_21] : memref<1x128xf32, #tpu.memory_space<vmem>>, vector<1x128xf32>
    tpu.vector_store %arg9[%c0_20, %c0_21], %25 {strides = array<i32>} : memref<1x128xf32, #tpu.memory_space<vmem>>, vector<1x128xf32>,
    %c0_22 = arith.constant 0 : index
    %c0_23 = arith.constant 0 : index
    %27 = vector.load %arg10[%c0_22, %c0_23] : memref<1x128xf32, #tpu.memory_space<vmem>>, vector<1x128xf32>
    %28 = arith.mulf %6, %6 : vector<128x128xf32>
    %cst_24 = arith.constant dense<0.000000e+00> : vector<128xf32>
    %29 = vector.multi_reduction <add>, %28, %cst_24 [0] : vector<128x128xf32> to vector<128xf32>
    %30 = vector.shape_cast %29 : vector<128xf32> to vector<1x128xf32>
    %31 = arith.addf %27, %30 : vector<1x128xf32>
    %c0_25 = arith.constant 0 : index
    %c0_26 = arith.constant 0 : index
    %32 = vector.load %arg10[%c0_25, %c0_26] : memref<1x128xf32, #tpu.memory_space<vmem>>, vector<1x128xf32>
    tpu.vector_store %arg10[%c0_25, %c0_26], %31 {strides = array<i32>} : memref<1x128xf32, #tpu.memory_space<vmem>>, vector<1x128xf32>,
    %c0_i32_27 = arith.constant 0 : i32
    %33 = arith.cmpi eq, %arg2, %c0_i32_27 : i32
    %34 = arith.extui %33 : i1 to i32
    %c0_i32_28 = arith.constant 0 : i32
    %35 = arith.cmpi ne, %34, %c0_i32_28 : i32
    scf.if %35 {
      %c0_29 = arith.constant 0 : index
      %c0_30 = arith.constant 0 : index
      %36 = vector.load %arg7[%c0_29, %c0_30] : memref<128x1xf32, #tpu.memory_space<vmem>>, vector<128x1xf32>
      %cst_31 = arith.constant 1.250000e-01 : f32
      %37 = vector.broadcast %cst_31 : f32 to vector<128x1xf32>
      %38 = arith.mulf %36, %37 : vector<128x1xf32>
      %c0_32 = arith.constant 0 : index
      %c0_33 = arith.constant 0 : index
      %39 = vector.load %arg8[%c0_32, %c0_33] : memref<128x1xf32, #tpu.memory_space<vmem>>, vector<128x1xf32>
      %cst_34 = arith.constant 1.250000e-01 : f32
      %40 = vector.broadcast %cst_34 : f32 to vector<128x1xf32>
      %41 = arith.mulf %39, %40 : vector<128x1xf32>
      %42 = arith.mulf %38, %38 : vector<128x1xf32>
      %43 = arith.subf %41, %42 : vector<128x1xf32>
      %cst_35 = arith.constant 0.000000e+00 : f32
      %44 = vector.broadcast %cst_35 : f32 to vector<128x1xf32>
      %45 = arith.maximumf %43, %44 : vector<128x1xf32>
      %cst_36 = arith.constant 9.99999974E-6 : f32
      %46 = vector.broadcast %cst_36 : f32 to vector<128x1xf32>
      %47 = arith.addf %45, %46 : vector<128x1xf32>
      %48 = math.rsqrt %47 : vector<128x1xf32>
      %c0_37 = arith.constant 0 : index
      %c0_38 = arith.constant 0 : index
      %49 = vector.load %arg9[%c0_37, %c0_38] : memref<1x128xf32, #tpu.memory_space<vmem>>, vector<1x128xf32>
      %cst_39 = arith.constant 1.250000e-01 : f32
      %50 = vector.broadcast %cst_39 : f32 to vector<1x128xf32>
      %51 = arith.mulf %49, %50 : vector<1x128xf32>
      %c0_40 = arith.constant 0 : index
      %c0_41 = arith.constant 0 : index
      %52 = vector.load %arg10[%c0_40, %c0_41] : memref<1x128xf32, #tpu.memory_space<vmem>>, vector<1x128xf32>
      %cst_42 = arith.constant 1.250000e-01 : f32
      %53 = vector.broadcast %cst_42 : f32 to vector<1x128xf32>
      %54 = arith.mulf %52, %53 : vector<1x128xf32>
      %55 = arith.mulf %51, %51 : vector<1x128xf32>
      %56 = arith.subf %54, %55 : vector<1x128xf32>
      %cst_43 = arith.constant 0.000000e+00 : f32
      %57 = vector.broadcast %cst_43 : f32 to vector<1x128xf32>
      %58 = arith.maximumf %56, %57 : vector<1x128xf32>
      %cst_44 = arith.constant 9.99999974E-6 : f32
      %59 = vector.broadcast %cst_44 : f32 to vector<1x128xf32>
      %60 = arith.addf %58, %59 : vector<1x128xf32>
      %61 = math.rsqrt %60 : vector<1x128xf32>
      %c0_45 = arith.constant 0 : index
      %c0_46 = arith.constant 0 : index
      %62 = vector.load %arg6[%c0_45, %c0_46] : memref<128x128xf32, #tpu.memory_space<vmem>>, vector<128x128xf32>
      %cst_47 = arith.constant 1.250000e-01 : f32
      %63 = vector.broadcast %cst_47 : f32 to vector<128x128xf32>
      %64 = arith.mulf %62, %63 : vector<128x128xf32>
      %65 = vector.broadcast %38 : vector<128x1xf32> to vector<128x128xf32>
      %66 = vector.broadcast %51 : vector<1x128xf32> to vector<128x128xf32>
      %67 = arith.mulf %65, %66 : vector<128x128xf32>
      %68 = arith.subf %64, %67 : vector<128x128xf32>
      %69 = vector.broadcast %48 : vector<128x1xf32> to vector<128x128xf32>
      %70 = vector.broadcast %61 : vector<1x128xf32> to vector<128x128xf32>
      %71 = arith.mulf %69, %70 : vector<128x128xf32>
      %72 = arith.mulf %68, %71 : vector<128x128xf32>
      %c0_48 = arith.constant 0 : index
      %c0_49 = arith.constant 0 : index
      %73 = vector.load %arg6[%c0_48, %c0_49] : memref<128x128xf32, #tpu.memory_space<vmem>>, vector<128x128xf32>
      tpu.vector_store %arg6[%c0_48, %c0_49], %72 {strides = array<i32>} : memref<128x128xf32, #tpu.memory_space<vmem>>, vector<128x128xf32>,
      %c0_50 = arith.constant 0 : index
      %c0_51 = arith.constant 0 : index
      %74 = vector.load %arg6[%c0_50, %c0_51] : memref<128x128xf32, #tpu.memory_space<vmem>>, vector<128x128xf32>
      %75 = arith.mulf %74, %74 : vector<128x128xf32>
      %76 = vector.shape_cast %75 : vector<128x128xf32> to vector<1x128x128xf32>
      %cst_52 = arith.constant dense<0.000000e+00> : vector<1xf32>
      %77 = vector.multi_reduction <add>, %76, %cst_52 [1, 2] : vector<1x128x128xf32> to vector<1xf32>
      %78 = vector.shape_cast %77 : vector<1xf32> to vector<1x1x1xf32>
      %79 = vector.extract %78[0, 0, 0] : f32 from vector<1x1x1xf32>
      %cst_53 = arith.constant 5.000000e-03 : f32
      %80 = arith.mulf %cst_53, %79 : f32
      %81 = tpu.iota {dimensions = array<i32: 0>} : vector<128x128xi32>
      %c128_i32_54 = arith.constant 128 : i32
      %82 = arith.muli %arg0, %c128_i32_54 : i32
      %83 = vector.broadcast %82 : i32 to vector<128x128xi32>
      %84 = arith.addi %81, %83 : vector<128x128xi32>
      %85 = tpu.iota {dimensions = array<i32: 1>} : vector<128x128xi32>
      %c128_i32_55 = arith.constant 128 : i32
      %86 = arith.muli %arg1, %c128_i32_55 : i32
      %87 = vector.broadcast %86 : i32 to vector<128x128xi32>
      %88 = arith.addi %85, %87 : vector<128x128xi32>
      %89 = arith.cmpi eq, %84, %88 : vector<128x128xi32>
      %c32_i32 = arith.constant 32 : i32
      %90 = vector.broadcast %c32_i32 : i32 to vector<128x128xi32>
      %91 = arith.cmpi slt, %84, %90 : vector<128x128xi32>
      %92 = arith.andi %89, %91 : vector<128x128xi1>
      %cst_56 = arith.constant 1.000000e+00 : f32
      %93 = vector.broadcast %cst_56 : f32 to vector<128x128xf32>
      %94 = arith.subf %74, %93 : vector<128x128xf32>
      %95 = arith.mulf %94, %94 : vector<128x128xf32>
      %96 = arith.mulf %74, %74 : vector<128x128xf32>
      %cst_57 = arith.constant 5.000000e-03 : f32
      %97 = vector.broadcast %cst_57 : f32 to vector<128x128xf32>
      %98 = arith.mulf %97, %96 : vector<128x128xf32>
      %99 = arith.subf %95, %98 : vector<128x128xf32>
      %cst_58 = arith.constant 0.000000e+00 : f32
      %100 = vector.broadcast %cst_58 : f32 to vector<128x128xf32>
      %101 = arith.select %92, %99, %100 : vector<128x128xi1>, vector<128x128xf32>
      %102 = vector.shape_cast %101 : vector<128x128xf32> to vector<1x128x128xf32>
      %cst_59 = arith.constant dense<0.000000e+00> : vector<1xf32>
      %103 = vector.multi_reduction <add>, %102, %cst_59 [1, 2] : vector<1x128x128xf32> to vector<1xf32>
      %104 = vector.shape_cast %103 : vector<1xf32> to vector<1x1x1xf32>
      %105 = vector.extract %104[0, 0, 0] : f32 from vector<1x1x1xf32>
      %106 = arith.addf %80, %105 : f32
      %107 = tpu.iota {dimensions = array<i32: 0>} : vector<8x128xi32>
      %108 = tpu.iota {dimensions = array<i32: 1>} : vector<8x128xi32>
      %c0_i32_60 = arith.constant 0 : i32
      %109 = vector.broadcast %c0_i32_60 : i32 to vector<8x128xi32>
      %110 = arith.cmpi eq, %107, %109 : vector<8x128xi32>
      %c0_i32_61 = arith.constant 0 : i32
      %111 = vector.broadcast %c0_i32_61 : i32 to vector<8x128xi32>
      %112 = arith.cmpi eq, %108, %111 : vector<8x128xi32>
      %113 = arith.andi %110, %112 : vector<8x128xi1>
      %cst_62 = arith.constant 0.000000e+00 : f32
      %114 = vector.broadcast %106 : f32 to vector<8x128xf32>
      %115 = vector.broadcast %cst_62 : f32 to vector<8x128xf32>
      %116 = arith.select %113, %114, %115 : vector<8x128xi1>, vector<8x128xf32>
      %c0_63 = arith.constant 0 : index
      %c0_64 = arith.constant 0 : index
      %117 = vector.load %arg5[%c0_63, %c0_64] : memref<8x128xf32, #tpu.memory_space<vmem>>, vector<8x128xf32>
      tpu.vector_store %arg5[%c0_63, %c0_64], %116 {strides = array<i32>} : memref<8x128xf32, #tpu.memory_space<vmem>>, vector<8x128xf32>,
    } else {
    }
    return
  }
  func.func @transform_0(%arg0: i32, %arg1: i32, %arg2: i32) -> (i32, i32) {
    %c0_i32 = arith.constant 0 : i32
    %c0_i32_0 = arith.constant 0 : i32
    return %arg0, %c0_i32 : i32, i32
  }
  func.func @transform_1(%arg0: i32, %arg1: i32, %arg2: i32) -> (i32, i32) {
    %c0_i32 = arith.constant 0 : i32
    return %arg2, %arg1 : i32, i32
  }
  func.func @transform_2(%arg0: i32, %arg1: i32, %arg2: i32) -> (i32, i32) {
    %c0_i32 = arith.constant 0 : i32
    return %arg0, %arg1 : i32, i32
  }
}

</mosaic_0001>

<bundles_post_ra>
// kernel: barlow_twins_loss.1
= control target key start
LH: loop header
LB: loop body
LE: loop exit
PB: predicated region body
PF: predicated region fallthrough
CT: control target
= control target key end

     0   :  { %vm31_vm0 = vcmask 7168   ;;  %v1415_v2 = vmov 0.0   ;;  %s1845_s0 = inlined_call_operand.vmem [shape: f32[128,128], index: 0, kind: input, shape index: {}]   ;;  %s1846_s1 = inlined_call_operand.vmem [shape: f32[128,128], index: 1, kind: input, shape index: {}]   ;;  %s1847_s2 = inlined_call_operand.vmem [shape: f32[8,128], index: 2, kind: output, shape index: {}]  }
   0x1   :  { %v1435_v0 = vld [vmem:[%s1845_s0 + $0x10] sm:$0xff]  ;;  %v70_v1 = vld [vmem:[%s1845_s0] sm:$0xff]  ;;  %64 = vst [vmem:[#allocation5] sm:$0x1] %v1415_v2  ;;  %65 = vst [vmem:[#allocation6] sm:$0x1] %v1415_v2 }
   0x2   :  { %34 = vst.msk [vmem:[#allocation3 + $0x10] sm:$0xff] %vm31_vm0, %v1415_v2  ;;  %32 = vst.msk [vmem:[#allocation3] sm:$0xff] %vm31_vm0, %v1415_v2  ;;  %315 = vadd.xlane.f32.xlu1 %v1435_v0  ;;  %311 = vadd.xlane.f32.xlu0 %v70_v1  ;;  %v392_v3 = vmul.f32 %v70_v1, %v70_v1  ;;  %v1476_v4 = vld [vmem:[%s1845_s0 + $0x8] sm:$0xff]  ;;  %v1481_v5 = vld [vmem:[%s1845_s0 + $0x40] sm:$0xff]  ;;  %v394_v19 = vmul.f32 %v1435_v0, %v1435_v0 }
   0x3   :  { %33 = vst.msk [vmem:[#allocation3 + $0x8] sm:$0xff] %vm31_vm0, %v1415_v2  ;;  %35 = vst.msk [vmem:[#allocation3 + $0x18] sm:$0xff] %vm31_vm0, %v1415_v2  ;;  %1317 = vmatprep.mubr.f32.mxu0 %v70_v1  ;;  %1329 = vmatprep.mubr.f32.mxu1 %v1481_v5  ;;  %v1487_v6 = vld [vmem:[%s1846_s1] sm:$0xff]  ;;  %v1492_v7 = vld [vmem:[%s1846_s1 + $0x8] sm:$0xff]  ;;  %v393_v8 = vmul.f32 %v1476_v4, %v1476_v4 }
   0x4   :  { %36 = vst.msk [vmem:[#allocation3 + $0x20] sm:$0xff] %vm31_vm0, %v1415_v2  ;;  %37 = vst.msk [vmem:[#allocation3 + $0x28] sm:$0xff] %vm31_vm0, %v1415_v2  ;;  %v1500_v9 = vld [vmem:[%s1846_s1 + $0x10] sm:$0xff]  ;;  %v473_v10 = vadd.f32 %v1492_v7, %v1487_v6  ;;  %v497_v11 = vmul.f32 %v1487_v6, %v1487_v6  ;;  %v1509_v12 = vld [vmem:[%s1845_s0 + $0x18] sm:$0xff]  ;;  %v498_v13 = vmul.f32 %v1492_v7, %v1492_v7 }
   0x5   :  { %38 = vst.msk [vmem:[#allocation3 + $0x30] sm:$0xff] %vm31_vm0, %v1415_v2  ;;  %39 = vst.msk [vmem:[#allocation3 + $0x38] sm:$0xff] %vm31_vm0, %v1415_v2  ;;  %v499_v14 = vmul.f32 %v1500_v9, %v1500_v9  ;;  %v1518_v15 = vld [vmem:[%s1846_s1 + $0x18] sm:$0xff]  ;;  %v1529_v20 = vld [vmem:[%s1846_s1 + $0x20] sm:$0xff]  ;;  %v395_v32 = vmul.f32 %v1509_v12, %v1509_v12 }
   0x6   :  { %40 = vst.msk [vmem:[#allocation3 + $0x40] sm:$0xff] %vm31_vm0, %v1415_v2  ;;  %41 = vst.msk [vmem:[#allocation3 + $0x48] sm:$0xff] %vm31_vm0, %v1415_v2  ;;  %313 = vadd.xlane.f32.xlu0 %v1476_v4  ;;  %408 = vadd.xlane.f32.xlu1 %v392_v3  ;;  %v474_v16 = vadd.f32 %v473_v10, %v1500_v9  ;;  %v500_v17 = vmul.f32 %v1518_v15, %v1518_v15  ;;  %v1534_v21 = vld [vmem:[%s1846_s1 + $0x70] sm:$0xff]  ;;  %v1539_v22 = vld [vmem:[%s1846_s1 + $0x78] sm:$0xff] }
   0x7   :  { %42 = vst.msk [vmem:[#allocation3 + $0x50] sm:$0xff] %vm31_vm0, %v1415_v2  ;;  %43 = vst.msk [vmem:[#allocation3 + $0x58] sm:$0xff] %vm31_vm0, %v1415_v2  ;;  %v513_v18 = vadd.f32 %v498_v13, %v497_v11  ;;  %v1545_v24 = vld [vmem:[%s1845_s0 + $0x20] sm:$0xff]  ;;  %1285 = vmatprep.subr.mxu0 %v1539_v22  ;;  %v501_v25 = vmul.f32 %v1529_v20, %v1529_v20  ;;  %v1553_v27 = vld [vmem:[%s1846_s1 + $0x28] sm:$0xff]  ;;  %1341 = vmatprep.subr.mxu1 %v1539_v22 }
   0x8   :  { %44 = vst.msk [vmem:[#allocation3 + $0x60] sm:$0xff] %vm31_vm0, %v1415_v2  ;;  %45 = vst.msk [vmem:[#allocation3 + $0x68] sm:$0xff] %vm31_vm0, %v1415_v2  ;;  %v475_v23 = vadd.f32 %v474_v16, %v1518_v15  ;;  %1286 = vmatpush3.msra.mxu0 %v1539_v22  ;;  %v1560_v29 = vld [vmem:[%s1846_s1 + $0x68] sm:$0xff]  ;;  %v502_v30 = vmul.f32 %v1553_v27, %v1553_v27  ;;  %v1572_v33 = vld [vmem:[%s1846_s1 + $0x30] sm:$0xff]  ;;  %1357 = vmatpush3.msra.mxu1 %v1539_v22 }
   0x9   :  { %46 = vst.msk [vmem:[#allocation3 + $0x70] sm:$0xff] %vm31_vm0, %v1415_v2  ;;  %47 = vst.msk [vmem:[#allocation3 + $0x78] sm:$0xff] %vm31_vm0, %v1415_v2  ;;  %v514_v26 = vadd.f32 %v513_v18, %v499_v14  ;;  %1287 = vmatprep.subr.mxu0 %v1534_v21  ;;  %v1578_v35 = vld [vmem:[%s1845_s0 + $0x28] sm:$0xff]  ;;  %v503_v36 = vmul.f32 %v1572_v33, %v1572_v33  ;;  %v1587_v38 = vld [vmem:[%s1846_s1 + $0x38] sm:$0xff]  ;;  %1342 = vmatprep.subr.mxu1 %v1534_v21 }
   0xa   :  { %48 = vst.msk [vmem:[#allocation4] sm:$0xff] %vm31_vm0, %v1415_v2  ;;  %49 = vst.msk [vmem:[#allocation4 + $0x8] sm:$0xff] %vm31_vm0, %v1415_v2  ;;  %410 = vadd.xlane.f32.xlu0 %v393_v8  ;;  %317 = vadd.xlane.f32.xlu1 %v1509_v12  ;;  %v476_v28 = vadd.f32 %v475_v23, %v1529_v20  ;;  %v98_v39 = vld [vmem:[%s1846_s1 + $0x60] sm:$0xff]  ;;  %v504_v41 = vmul.f32 %v1587_v38, %v1587_v38  ;;  %v97_v45 = vld [vmem:[%s1846_s1 + $0x58] sm:$0xff] }
   0xb   :  { %50 = vst.msk [vmem:[#allocation4 + $0x10] sm:$0xff] %vm31_vm0, %v1415_v2  ;;  %51 = vst.msk [vmem:[#allocation4 + $0x18] sm:$0xff] %vm31_vm0, %v1415_v2  ;;  %v515_v31 = vadd.f32 %v514_v26, %v500_v17  ;;  %1288 = vmatpush3.msra.mxu0 %v1534_v21  ;;  %1358 = vmatpush3.msra.mxu1 %v1534_v21  ;;  %v396_v43 = vmul.f32 %v1545_v24, %v1545_v24  ;;  %v94_v44 = vld [vmem:[%s1846_s1 + $0x40] sm:$0xff]  ;;  %v1612_v47 = vld [vmem:[%s1845_s0 + $0x30] sm:$0xff] }
   0xc   :  { %52 = vst.msk [vmem:[#allocation4 + $0x20] sm:$0xff] %vm31_vm0, %v1415_v2  ;;  %53 = vst.msk [vmem:[#allocation4 + $0x28] sm:$0xff] %vm31_vm0, %v1415_v2  ;;  %v477_v34 = vadd.f32 %v476_v28, %v1553_v27  ;;  %1289 = vmatprep.subr.mxu0 %v1560_v29  ;;  %v505_v48 = vmul.f32 %v94_v44, %v94_v44  ;;  %1343 = vmatprep.subr.mxu1 %v1560_v29  ;;  %v95_v50 = vld [vmem:[%s1846_s1 + $0x48] sm:$0xff]  ;;  %v96_v52 = vld [vmem:[%s1846_s1 + $0x50] sm:$0xff] }
   0xd   :  { %54 = vst.msk [vmem:[#allocation4 + $0x30] sm:$0xff] %vm31_vm0, %v1415_v2  ;;  %55 = vst.msk [vmem:[#allocation4 + $0x38] sm:$0xff] %vm31_vm0, %v1415_v2  ;;  %v516_v37 = vadd.f32 %v515_v31, %v501_v25  ;;  %1290 = vmatpush3.msra.mxu0 %v1560_v29  ;;  %1359 = vmatpush3.msra.mxu1 %v1560_v29  ;;  %v506_v53 = vmul.f32 %v95_v50, %v95_v50  ;;  %v1628_v57 = vld [vmem:[%s1845_s0 + $0x38] sm:$0xff]  ;;  %v1642_v16 = vld [vmem:[%s1845_s0 + $0x48] sm:$0xff] }
   0xe   :  { %56 = vst.msk [vmem:[#allocation4 + $0x40] sm:$0xff] %vm31_vm0, %v1415_v2  ;;  %57 = vst.msk [vmem:[#allocation4 + $0x48] sm:$0xff] %vm31_vm0, %v1415_v2  ;;  %412 = vadd.xlane.f32.xlu0 %v394_v19  ;;  %319 = vadd.xlane.f32.xlu1 %v1545_v24  ;;  %v478_v40 = vadd.f32 %v477_v34, %v1572_v33  ;;  %v397_v55 = vmul.f32 %v1578_v35, %v1578_v35 }
   0xf   :  { %58 = vst.msk [vmem:[#allocation4 + $0x50] sm:$0xff] %vm31_vm0, %v1415_v2  ;;  %59 = vst.msk [vmem:[#allocation4 + $0x58] sm:$0xff] %vm31_vm0, %v1415_v2  ;;  %v517_v42 = vadd.f32 %v516_v37, %v502_v30  ;;  %1291 = vmatprep.subr.mxu0 %v98_v39  ;;  %1344 = vmatprep.subr.mxu1 %v98_v39  ;;  %v507_v58 = vmul.f32 %v96_v52, %v96_v52 }
  0x10   :  { %60 = vst.msk [vmem:[#allocation4 + $0x60] sm:$0xff] %vm31_vm0, %v1415_v2  ;;  %61 = vst.msk [vmem:[#allocation4 + $0x68] sm:$0xff] %vm31_vm0, %v1415_v2  ;;  %v479_v46 = vadd.f32 %v478_v40, %v1587_v38  ;;  %1292 = vmatpush3.msra.mxu0 %v98_v39  ;;  %1360 = vmatpush3.msra.mxu1 %v98_v39  ;;  %v508_v61 = vmul.f32 %v97_v45, %v97_v45 }
  0x11   :  { %62 = vst.msk [vmem:[#allocation4 + $0x70] sm:$0xff] %vm31_vm0, %v1415_v2  ;;  %63 = vst.msk [vmem:[#allocation4 + $0x78] sm:$0xff] %vm31_vm0, %v1415_v2  ;;  %v518_v49 = vadd.f32 %v517_v42, %v503_v36  ;;  %1293 = vmatprep.subr.mxu0 %v97_v45  ;;  %1345 = vmatprep.subr.mxu1 %v97_v45  ;;  %v398_v63 = vmul.f32 %v1612_v47, %v1612_v47 }
  0x12   :  { %414 = vadd.xlane.f32.xlu0 %v395_v32  ;;  %321 = vadd.xlane.f32.xlu1 %v1578_v35  ;;  %v480_v51 = vadd.f32 %v479_v46, %v94_v44  ;;  %v509_v2 = vmul.f32 %v98_v39, %v98_v39  ;;  %v510_v10 = vmul.f32 %v1560_v29, %v1560_v29  ;;  %v1672_v32 = vld [vmem:[%s1845_s0 + $0x58] sm:$0xff] }
  0x13   :  { %v519_v54 = vadd.f32 %v518_v49, %v504_v41  ;;  %1294 = vmatpush3.msra.mxu0 %v97_v45  ;;  %1361 = vmatpush3.msra.mxu1 %v97_v45  ;;  %v399_v13 = vmul.f32 %v1628_v57, %v1628_v57  ;;  %v511_v17 = vmul.f32 %v1534_v21, %v1534_v21 }
  0x14   :  { %v481_v56 = vadd.f32 %v480_v51, %v95_v50  ;;  %1295 = vmatprep.subr.mxu0 %v96_v52  ;;  %1346 = vmatprep.subr.mxu1 %v96_v52  ;;  %v512_v23 = vmul.f32 %v1539_v22, %v1539_v22  ;;  %v400_v26 = vmul.f32 %v1481_v5, %v1481_v5  ;;  %v84_v51 = vld [vmem:[%s1845_s0 + $0x70] sm:$0xff] }
  0x15   :  { %v520_v59 = vadd.f32 %v519_v54, %v505_v48  ;;  %1296 = vmatpush3.msra.mxu0 %v96_v52  ;;  %1362 = vmatpush3.msra.mxu1 %v96_v52  ;;  %v496_v48 = vld [vmem:[#allocation6] sm:$0x1] }
  0x16   :  { %416 = vadd.xlane.f32.xlu0 %v396_v43  ;;  %323 = vadd.xlane.f32.xlu1 %v1612_v47  ;;  %v482_v60 = vadd.f32 %v481_v56, %v96_v52  ;;  %v85_v52 = vld [vmem:[%s1845_s0 + $0x78] sm:$0xff]  ;;  %v296_v56 = vld [vmem:[#allocation3 + $0x8] sm:$0xff] }
  0x17   :  { %v521_v62 = vadd.f32 %v520_v59, %v506_v53  ;;  %1297 = vmatprep.subr.mxu0 %v95_v50  ;;  %1347 = vmatprep.subr.mxu1 %v95_v50  ;;  %v1416_v53 = vmov 0  }
  0x18   :  { %v483_v1 = vadd.f32 %v482_v60, %v97_v45  ;;  %1298 = vmatpush3.msra.mxu0 %v95_v50  ;;  %1363 = vmatpush3.msra.mxu1 %v95_v50  ;;  %v83_v45 = vld [vmem:[%s1845_s0 + $0x68] sm:$0xff] }
  0x19   :  { %v522_v3 = vadd.f32 %v521_v62, %v507_v58  ;;  %1299 = vmatprep.subr.mxu0 %v94_v44  ;;  %1348 = vmatprep.subr.mxu1 %v94_v44  ;;  %v376_v58 = vld [vmem:[#allocation4] sm:$0xff] }
  0x1a   :  { %418 = vadd.xlane.f32.xlu0 %v397_v55  ;;  %325 = vadd.xlane.f32.xlu1 %v1628_v57  ;;  %v484_v8 = vadd.f32 %v483_v1, %v98_v39 }
  0x1b   :  { %v523_v11 = vadd.f32 %v522_v3, %v508_v61  ;;  %1300 = vmatpush3.msra.mxu0 %v94_v44  ;;  %1364 = vmatpush3.msra.mxu1 %v94_v44  ;;  %v403_v44 = vmul.f32 %v1672_v32, %v1672_v32  ;;  %v377_v61 = vld [vmem:[#allocation4 + $0x8] sm:$0xff]  ;;  %v378_v3 = vld [vmem:[#allocation4 + $0x10] sm:$0xff] }
  0x1c   :  { %v485_v14 = vadd.f32 %v484_v8, %v1560_v29  ;;  %1301 = vmatprep.subr.mxu0 %v1587_v38  ;;  %1349 = vmatprep.subr.mxu1 %v1587_v38  ;;  %v299_v8 = vld [vmem:[#allocation3 + $0x20] sm:$0xff] }
  0x1d   :  { %v524_v18 = vadd.f32 %v523_v11, %v509_v2  ;;  %1302 = vmatpush3.msra.mxu0 %v1587_v38  ;;  %1365 = vmatpush3.msra.mxu1 %v1587_v38 }
  0x1e   :  { %420 = vadd.xlane.f32.xlu0 %v398_v63  ;;  %327 = vadd.xlane.f32.xlu1 %v1481_v5  ;;  %v486_v19 = vadd.f32 %v485_v14, %v1534_v21  ;;  %v1658_v21 = vld [vmem:[%s1845_s0 + $0x50] sm:$0xff]  ;;  %v401_v5 = vmul.f32 %v1642_v16, %v1642_v16 }
  0x1f   :  { %v525_v25 = vadd.f32 %v524_v18, %v510_v10  ;;  %1303 = vmatprep.subr.mxu0 %v1572_v33  ;;  %1350 = vmatprep.subr.mxu1 %v1572_v33  ;;  %v402_v38 = vmul.f32 %v1658_v21, %v1658_v21  ;;  %v379_v18 = vld [vmem:[#allocation4 + $0x18] sm:$0xff] }
  0x20   :  { %v487_v28 = vadd.f32 %v486_v19, %v1539_v22  ;;  %1304 = vmatpush3.msra.mxu0 %v1572_v33  ;;  %1366 = vmatpush3.msra.mxu1 %v1572_v33  ;;  %v82_v33 = vld [vmem:[%s1845_s0 + $0x60] sm:$0xff] }
  0x21   :  { %v526_v29 = vadd.f32 %v525_v25, %v511_v17  ;;  %1305 = vmatprep.subr.mxu0 %v1553_v27  ;;  %1351 = vmatprep.subr.mxu1 %v1553_v27  ;;  %v404_v50 = vmul.f32 %v82_v33, %v82_v33 }
  0x22   :  { %422 = vadd.xlane.f32.xlu0 %v399_v13  ;;  %329 = vadd.xlane.f32.xlu1 %v1642_v16  ;;  %v488_v30 = vrot.slane %v487_v28, 4 }
  0x23   :  { %v527_v31 = vadd.f32 %v526_v29, %v512_v23  ;;  %1306 = vmatpush3.msra.mxu0 %v1553_v27  ;;  %1367 = vmatpush3.msra.mxu1 %v1553_v27  ;;  %v472_v27 = vld [vmem:[#allocation5] sm:$0x1]  ;;  %v300_v23 = vld [vmem:[#allocation3 + $0x28] sm:$0xff] }
  0x24   :  { %v489_v22 = vadd.f32 %v488_v30, %v487_v28  ;;  %1307 = vmatprep.subr.mxu0 %v1529_v20  ;;  %1352 = vmatprep.subr.mxu1 %v1529_v20 }
  0x25   :  { %v528_v34 = vrot.slane %v527_v31, 4  ;;  %1308 = vmatpush3.msra.mxu0 %v1529_v20  ;;  %1368 = vmatpush3.msra.mxu1 %v1529_v20 }
  0x26   :  { %424 = vadd.xlane.f32.xlu0 %v400_v26  ;;  %331 = vadd.xlane.f32.xlu1 %v1658_v21  ;;  %v490_v36 = vrot.slane %v489_v22, 2 }
  0x27   :  { %v529_v37 = vadd.f32 %v528_v34, %v527_v31  ;;  %1309 = vmatprep.subr.mxu0 %v1518_v15  ;;  %1353 = vmatprep.subr.mxu1 %v1518_v15 }
  0x28   :  { %v491_v39 = vadd.f32 %v490_v36, %v489_v22  ;;  %1310 = vmatpush3.msra.mxu0 %v1518_v15  ;;  %1369 = vmatpush3.msra.mxu1 %v1518_v15  ;;  %v380_v36 = vld [vmem:[#allocation4 + $0x20] sm:$0xff] }
  0x29   :  { %v530_v40 = vrot.slane %v529_v37, 2  ;;  %1311 = vmatprep.subr.mxu0 %v1500_v9  ;;  %1354 = vmatprep.subr.mxu1 %v1500_v9 }
  0x2a   :  { %426 = vadd.xlane.f32.xlu0 %v401_v5  ;;  %333 = vadd.xlane.f32.xlu1 %v1672_v32  ;;  %v492_v41 = vrot.slane %v491_v39, 1 }
  0x2b   :  { %v531_v42 = vadd.f32 %v530_v40, %v529_v37  ;;  %1312 = vmatpush3.msra.mxu0 %v1500_v9  ;;  %1370 = vmatpush3.msra.mxu1 %v1500_v9  ;;  %v405_v9 = vmul.f32 %v83_v45, %v83_v45  ;;  %v301_v37 = vld [vmem:[#allocation3 + $0x30] sm:$0xff] }
  0x2c   :  { %v493_v43 = vadd.f32 %v492_v41, %v491_v39  ;;  %1313 = vmatprep.subr.mxu0 %v1492_v7  ;;  %1355 = vmatprep.subr.mxu1 %v1492_v7 }
  0x2d   :  { %v532_v46 = vrot.slane %v531_v42, 1  ;;  %1314 = vmatpush3.msra.mxu0 %v1492_v7  ;;  %1371 = vmatpush3.msra.mxu1 %v1492_v7  ;;  %v407_v7 = vmul.f32 %v85_v52, %v85_v52 }
  0x2e   :  { %428 = vadd.xlane.f32.xlu0 %v402_v38  ;;  %335 = vadd.xlane.f32.xlu1 %v82_v33  ;;  %v494_v20 = vadd.f32 %v493_v43, %v472_v27 }
  0x2f   :  { %v533_v49 = vadd.f32 %v532_v46, %v531_v42  ;;  %1315 = vmatprep.subr.mxu0 %v1487_v6  ;;  %1356 = vmatprep.subr.mxu1 %v1487_v6 }
  0x30   :  { %495 = vst [vmem:[#allocation5] sm:$0x1] %v494_v20  ;;  %1316 = vmatpush3.msra.mxu0 %v1487_v6  ;;  %1372 = vmatpush3.msra.mxu1 %v1487_v6  ;;  %v295_v6 = vld [vmem:[#allocation3] sm:$0xff] }
  0x31   :  { %v534_v15 = vadd.f32 %v533_v49, %v496_v48  ;;  %1318 = vmatmul.mubr.f32.vlgmr.msra.gmra.mxu0 %v1476_v4  ;;  %1330 = vmatmul.mubr.f32.vlgmr.msra.gmra.mxu1 %v1642_v16  ;;  %v406_v4 = vmul.f32 %v84_v51, %v84_v51  ;;  %v381_v48 = vld [vmem:[#allocation4 + $0x28] sm:$0xff]  ;;  %v302_v49 = vld [vmem:[#allocation3 + $0x38] sm:$0xff] }
  0x32   :  { %430 = vadd.xlane.f32.xlu0 %v403_v44  ;;  %337 = vadd.xlane.f32.xlu1 %v83_v45 }
  0x33   :  { %535 = vst [vmem:[#allocation6] sm:$0x1] %v534_v15  ;;  %1320 = vmatprep.mubr.f32.mxu0 %v1435_v0  ;;  %1379 = vset.pattern.permute.xlu0 %v1416_v53  ;;  %v297_v0 = vld [vmem:[#allocation3 + $0x10] sm:$0xff] }
  0x34   :  { %1332 = vmatprep.mubr.f32.mxu1 %v1658_v21  ;;  %1380 = vset.pattern.permute.xlu1 %v1416_v53 }
  0x35   :  { %1321 = vmatmul.mubr.f32.gmra.mxu0 %v1509_v12  ;;  %1333 = vmatmul.mubr.f32.gmra.mxu1 %v1672_v32 }
  0x36   :  { %432 = vadd.xlane.f32.xlu0 %v404_v50  ;;  %339 = vadd.xlane.f32.xlu1 %v84_v51 }
  0x37   :  { %1323 = vmatprep.mubr.f32.mxu0 %v1545_v24  ;;  %1335 = vmatprep.mubr.f32.mxu1 %v82_v33 }
  0x39   :  { %1324 = vmatmul.mubr.f32.gmra.mxu0 %v1578_v35  ;;  %1336 = vmatmul.mubr.f32.gmra.mxu1 %v83_v45 }
  0x3a   :  { %434 = vadd.xlane.f32.xlu0 %v405_v9  ;;  %341 = vadd.xlane.f32.xlu1 %v85_v52 }
  0x3b   :  { %1326 = vmatprep.mubr.f32.mxu0 %v1612_v47  ;;  %1338 = vmatprep.mubr.f32.mxu1 %v84_v51 }
  0x3d   :  { %1327 = vmatmul.mubr.f32.gmra.mxu0 %v1628_v57  ;;  %1339 = vmatmul.mubr.f32.gmra.mxu1 %v85_v52  ;;  %v298_v57 = vld [vmem:[#allocation3 + $0x18] sm:$0xff] }
  0x3e   :  { %436 = vadd.xlane.f32.xlu0 %v406_v4  ;;  %438 = vadd.xlane.f32.xlu1 %v407_v7 }
  0x8b   :  { %v316_v12 = vpop.xlane.xlu1 %315  ;;  %v312_v54 = vpop.xlane.xlu0 %311 }
  0x8c   :  { %v345_v24 = vadd.f32 %v316_v12, %v297_v0  ;;  %v343_v55 = vadd.f32 %v312_v54, %v295_v6  ;;  %v382_v54 = vld [vmem:[#allocation4 + $0x30] sm:$0xff] }
  0x8e   :  { %362 = vst.msk [vmem:[#allocation3 + $0x10] sm:$0xff] %vm31_vm0, %v345_v24  ;;  %360 = vst.msk [vmem:[#allocation3] sm:$0xff] %vm31_vm0, %v343_v55 }
  0x8f   :  { %v314_v35 = vpop.xlane.xlu0 %313  ;;  %v409_v59 = vpop.xlane.xlu1 %408 }
  0x90   :  { %v344_v47 = vadd.f32 %v314_v35, %v296_v56  ;;  %v440_v60 = vadd.f32 %v409_v59, %v376_v58  ;;  %v303_v56 = vld [vmem:[#allocation3 + $0x40] sm:$0xff] }
  0x92   :  { %361 = vst.msk [vmem:[#allocation3 + $0x8] sm:$0xff] %vm31_vm0, %v344_v47  ;;  %456 = vst.msk [vmem:[#allocation4] sm:$0xff] %vm31_vm0, %v440_v60 }
  0x93   :  { %v411_v62 = vpop.xlane.xlu0 %410  ;;  %v318_v63 = vpop.xlane.xlu1 %317 }
  0x94   :  { %v441_v1 = vadd.f32 %v411_v62, %v377_v61  ;;  %v346_v2 = vadd.f32 %v318_v63, %v298_v57 }
  0x95   :  { %v539_v10 = vld [vmem:[#allocation3] sm:$0xff]  ;;  %v541_v31 = vld [vmem:[#allocation3 + $0x10] sm:$0xff] }
  0x96   :  { %457 = vst.msk [vmem:[#allocation4 + $0x8] sm:$0xff] %vm31_vm0, %v441_v1  ;;  %363 = vst.msk [vmem:[#allocation3 + $0x18] sm:$0xff] %vm31_vm0, %v346_v2  ;;  %v555_v11 = vmul.f32 0.125, %v539_v10  ;;  %v557_v40 = vmul.f32 0.125, %v541_v31  ;;  %v305_v31 = vld [vmem:[#allocation3 + $0x50] sm:$0xff] }
  0x97   :  { %v413_v13 = vpop.xlane.xlu0 %412  ;;  %v320_v14 = vpop.xlane.xlu1 %319 }
  0x98   :  { %v442_v16 = vadd.f32 %v413_v13, %v378_v3  ;;  %v347_v17 = vadd.f32 %v320_v14, %v299_v8  ;;  %726 = vperm.xlu0 %1379, %v555_v11   ;;  %v603_v28 = vmul.f32 %v555_v11, %v555_v11  ;;  %v605_v9 = vmul.f32 %v557_v40, %v557_v40  ;;  %v383_v3 = vld [vmem:[#allocation4 + $0x38] sm:$0xff]  ;;  %v304_v11 = vld [vmem:[#allocation3 + $0x48] sm:$0xff] }
  0x99   :  { %v571_v19 = vld [vmem:[#allocation4] sm:$0xff]  ;;  %v540_v25 = vld [vmem:[#allocation3 + $0x8] sm:$0xff] }
  0x9a   :  { %458 = vst.msk [vmem:[#allocation4 + $0x10] sm:$0xff] %vm31_vm0, %v442_v16  ;;  %364 = vst.msk [vmem:[#allocation3 + $0x20] sm:$0xff] %vm31_vm0, %v347_v17  ;;  %v587_v26 = vmul.f32 0.125, %v571_v19  ;;  %v556_v21 = vmul.f32 0.125, %v540_v25 }
  0x9b   :  { %v415_v29 = vpop.xlane.xlu0 %414  ;;  %v322_v30 = vpop.xlane.xlu1 %321 }
  0x9c   :  { %v619_v5 = vsub.f32 %v587_v26, %v603_v28  ;;  %v443_v22 = vadd.f32 %v415_v29, %v379_v18  ;;  %v348_v32 = vadd.f32 %v322_v30, %v300_v23  ;;  %731 = vperm.xlu1 %1380, %v556_v21   ;;  %v604_v33 = vmul.f32 %v556_v21, %v556_v21  ;;  %v384_v21 = vld [vmem:[#allocation4 + $0x40] sm:$0xff] }
  0x9d   :  { %v572_v34 = vld [vmem:[#allocation4 + $0x8] sm:$0xff]  ;;  %v542_v41 = vld [vmem:[#allocation3 + $0x18] sm:$0xff] }
  0x9e   :  { %v635_v38 = vmax.f32 %v619_v5, 0.0  ;;  %459 = vst.msk [vmem:[#allocation4 + $0x18] sm:$0xff] %vm31_vm0, %v443_v22  ;;  %365 = vst.msk [vmem:[#allocation3 + $0x28] sm:$0xff] %vm31_vm0, %v348_v32  ;;  %v588_v39 = vmul.f32 0.125, %v572_v34  ;;  %v558_v50 = vmul.f32 0.125, %v542_v41 }
  0x9f   :  { %v417_v27 = vpop.xlane.xlu0 %416  ;;  %v324_v42 = vpop.xlane.xlu1 %323 }
  0xa0   :  { %v651_v43 = vadd.f32 1e-05, %v635_v38  ;;  %v620_v44 = vsub.f32 %v588_v39, %v604_v33  ;;  %v444_v45 = vadd.f32 %v417_v27, %v380_v36  ;;  %v349_v46 = vadd.f32 %v324_v42, %v301_v37  ;;  %736 = vperm.xlu1 %1380, %v557_v40   ;;  %v385_v27 = vld [vmem:[#allocation4 + $0x48] sm:$0xff] }
  0xa1   :  { %v573_v20 = vld [vmem:[#allocation4 + $0x10] sm:$0xff]  ;;  %v543_v52 = vld [vmem:[#allocation3 + $0x20] sm:$0xff]  ;;  %v606_v55 = vmul.f32 %v558_v50, %v558_v50 }
  0xa2   :  { %1381 = vrsqrt.f32 %v651_v43  ;;  %v636_v51 = vmax.f32 %v620_v44, 0.0  ;;  %460 = vst.msk [vmem:[#allocation4 + $0x20] sm:$0xff] %vm31_vm0, %v444_v45  ;;  %366 = vst.msk [vmem:[#allocation3 + $0x30] sm:$0xff] %vm31_vm0, %v349_v46  ;;  %v589_v15 = vmul.f32 0.125, %v573_v20  ;;  %v559_v58 = vmul.f32 0.125, %v543_v52  ;;  %v306_v44 = vld [vmem:[#allocation3 + $0x58] sm:$0xff] }
  0xa3   :  { %v419_v53 = vpop.xlane.xlu0 %418  ;;  %v326_v4 = vpop.xlane.xlu1 %325 }
  0xa4   :  { %v652_v7 = vadd.f32 1e-05, %v636_v51  ;;  %v621_v0 = vsub.f32 %v589_v15, %v605_v9  ;;  %v445_v6 = vadd.f32 %v419_v53, %v381_v48  ;;  %v350_v12 = vadd.f32 %v326_v4, %v302_v49  ;;  %741 = vperm.xlu1 %1380, %v558_v50   ;;  %v386_v4 = vld [vmem:[#allocation4 + $0x50] sm:$0xff] }
  0xa5   :  { %v574_v24 = vld [vmem:[#allocation4 + $0x18] sm:$0xff]  ;;  %v544_v35 = vld [vmem:[#allocation3 + $0x28] sm:$0xff]  ;;  %v607_v10 = vmul.f32 %v559_v58, %v559_v58 }
  0xa6   :  { %1383 = vrsqrt.f32 %v652_v7  ;;  %v637_v59 = vmax.f32 %v621_v0, 0.0  ;;  %461 = vst.msk [vmem:[#allocation4 + $0x28] sm:$0xff] %vm31_vm0, %v445_v6  ;;  %367 = vst.msk [vmem:[#allocation3 + $0x38] sm:$0xff] %vm31_vm0, %v350_v12  ;;  %v590_v47 = vmul.f32 0.125, %v574_v24  ;;  %v560_v60 = vmul.f32 0.125, %v544_v35  ;;  %v307_v6 = vld [vmem:[#allocation3 + $0x60] sm:$0xff] }
  0xa7   :  { %v421_v61 = vpop.xlane.xlu0 %420  ;;  %v328_v57 = vpop.xlane.xlu1 %327 }
  0xa8   :  { %v653_v62 = vadd.f32 1e-05, %v637_v59  ;;  %v622_v63 = vsub.f32 %v590_v47, %v606_v55  ;;  %v446_v1 = vadd.f32 %v421_v61, %v382_v54  ;;  %v351_v2 = vadd.f32 %v328_v57, %v303_v56  ;;  %746 = vperm.xlu1 %1380, %v559_v58   ;;  %751 = vperm.xlu0 %1379, %v560_v60   ;;  %v387_v57 = vld [vmem:[#allocation4 + $0x58] sm:$0xff] }
  0xa9   :  { %v575_v8 = vld [vmem:[#allocation4 + $0x20] sm:$0xff]  ;;  %v545_v13 = vld [vmem:[#allocation3 + $0x30] sm:$0xff]  ;;  %v608_v30 = vmul.f32 %v560_v60, %v560_v60 }
  0xaa   :  { %1385 = vrsqrt.f32 %v653_v62  ;;  %v638_v14 = vmax.f32 %v622_v63, 0.0  ;;  %462 = vst.msk [vmem:[#allocation4 + $0x30] sm:$0xff] %vm31_vm0, %v446_v1  ;;  %368 = vst.msk [vmem:[#allocation3 + $0x40] sm:$0xff] %vm31_vm0, %v351_v2  ;;  %v591_v16 = vmul.f32 0.125, %v575_v8  ;;  %v561_v17 = vmul.f32 0.125, %v545_v13  ;;  %v308_v1 = vld [vmem:[#allocation3 + $0x68] sm:$0xff] }
  0xab   :  { %v423_v18 = vpop.xlane.xlu0 %422  ;;  %v330_v19 = vpop.xlane.xlu1 %329 }
  0xac   :  { %v654_v23 = vadd.f32 1e-05, %v638_v14  ;;  %v623_v25 = vsub.f32 %v591_v16, %v607_v10  ;;  %v447_v26 = vadd.f32 %v423_v18, %v383_v3  ;;  %v352_v28 = vadd.f32 %v330_v19, %v304_v11  ;;  %756 = vperm.xlu0 %1379, %v561_v17  }
  0xad   :  { %v576_v29 = vld [vmem:[#allocation4 + $0x28] sm:$0xff]  ;;  %v546_v5 = vld [vmem:[#allocation3 + $0x38] sm:$0xff]  ;;  %v609_v43 = vmul.f32 %v561_v17, %v561_v17 }
  0xae   :  { %1387 = vrsqrt.f32 %v654_v23  ;;  %v639_v22 = vmax.f32 %v623_v25, 0.0  ;;  %v592_v32 = vmul.f32 0.125, %v576_v29  ;;  %463 = vst.msk [vmem:[#allocation4 + $0x38] sm:$0xff] %vm31_vm0, %v447_v26  ;;  %369 = vst.msk [vmem:[#allocation3 + $0x48] sm:$0xff] %vm31_vm0, %v352_v28  ;;  %v562_v34 = vmul.f32 0.125, %v546_v5  ;;  %v388_v23 = vld [vmem:[#allocation4 + $0x60] sm:$0xff] }
  0xaf   :  { %v1382_v36 = vpop.eup %1381  ;;  %v425_v37 = vpop.xlane.xlu0 %424  ;;  %v309_v28 = vld [vmem:[#allocation3 + $0x70] sm:$0xff] }
  0xb0   :  { %v332_v38 = vpop.xlane.xlu1 %331  ;;  %v655_v39 = vadd.f32 1e-05, %v639_v22  ;;  %v624_v33 = vsub.f32 %v592_v32, %v608_v30  ;;  %v448_v40 = vadd.f32 %v425_v37, %v384_v21  ;;  %844 = vperm.xlu1 %1380, %v1382_v36   ;;  %761 = vperm.xlu0 %1379, %v562_v34   ;;  %v610_v0 = vmul.f32 %v562_v34, %v562_v34 }
  0xb1   :  { %v353_v41 = vadd.f32 %v332_v38, %v305_v31  ;;  %v577_v42 = vld [vmem:[#allocation4 + $0x30] sm:$0xff]  ;;  %v547_v45 = vld [vmem:[#allocation3 + $0x40] sm:$0xff] }
  0xb2   :  { %1389 = vrsqrt.f32 %v655_v39  ;;  %v640_v46 = vmax.f32 %v624_v33, 0.0  ;;  %v593_v20 = vmul.f32 0.125, %v577_v42  ;;  %464 = vst.msk [vmem:[#allocation4 + $0x40] sm:$0xff] %vm31_vm0, %v448_v40  ;;  %v563_v48 = vmul.f32 0.125, %v547_v45  ;;  %v389_v39 = vld [vmem:[#allocation4 + $0x68] sm:$0xff] }
  0xb3   :  { %370 = vst.msk [vmem:[#allocation3 + $0x50] sm:$0xff] %vm31_vm0, %v353_v41  ;;  %v1384_v49 = vpop.eup %1383  ;;  %v427_v50 = vpop.xlane.xlu0 %426  ;;  %v310_v41 = vld [vmem:[#allocation3 + $0x78] sm:$0xff] }
  0xb4   :  { %v334_v51 = vpop.xlane.xlu1 %333  ;;  %v656_v15 = vadd.f32 1e-05, %v640_v46  ;;  %v625_v9 = vsub.f32 %v593_v20, %v609_v43  ;;  %v449_v52 = vadd.f32 %v427_v50, %v385_v27  ;;  %849 = vperm.xlu1 %1380, %v1384_v49   ;;  %766 = vperm.xlu0 %1379, %v563_v48   ;;  %v611_v63 = vmul.f32 %v563_v48, %v563_v48 }
  0xb5   :  { %v354_v53 = vadd.f32 %v334_v51, %v306_v44  ;;  %v578_v7 = vld [vmem:[#allocation4 + $0x38] sm:$0xff]  ;;  %v548_v12 = vld [vmem:[#allocation3 + $0x48] sm:$0xff] }
  0xb6   :  { %1391 = vrsqrt.f32 %v656_v15  ;;  %v641_v54 = vmax.f32 %v625_v9, 0.0  ;;  %v594_v24 = vmul.f32 0.125, %v578_v7  ;;  %465 = vst.msk [vmem:[#allocation4 + $0x48] sm:$0xff] %vm31_vm0, %v449_v52  ;;  %v564_v55 = vmul.f32 0.125, %v548_v12  ;;  %v390_v15 = vld [vmem:[#allocation4 + $0x70] sm:$0xff] }
  0xb7   :  { %371 = vst.msk [vmem:[#allocation3 + $0x58] sm:$0xff] %vm31_vm0, %v354_v53  ;;  %v1386_v56 = vpop.eup %1385  ;;  %v429_v58 = vpop.xlane.xlu0 %428  ;;  %v391_v53 = vld [vmem:[#allocation4 + $0x78] sm:$0xff] }
  0xb8   :  { %v336_v35 = vpop.xlane.xlu1 %335  ;;  %v657_v59 = vadd.f32 1e-05, %v641_v54  ;;  %v626_v47 = vsub.f32 %v594_v24, %v610_v0  ;;  %v450_v60 = vadd.f32 %v429_v58, %v386_v4  ;;  %854 = vperm.xlu1 %1380, %v1386_v56   ;;  %771 = vperm.xlu0 %1379, %v564_v55   ;;  %v612_v26 = vmul.f32 %v564_v55, %v564_v55 }
  0xb9   :  { %v355_v61 = vadd.f32 %v336_v35, %v307_v6  ;;  %v579_v62 = vld [vmem:[#allocation4 + $0x40] sm:$0xff] }
  0xba   :  { %v549_v2 = vld [vmem:[#allocation3 + $0x50] sm:$0xff]  ;;  %1393 = vrsqrt.f32 %v657_v59  ;;  %v642_v3 = vmax.f32 %v626_v47, 0.0  ;;  %v595_v8 = vmul.f32 0.125, %v579_v62  ;;  %466 = vst.msk [vmem:[#allocation4 + $0x50] sm:$0xff] %vm31_vm0, %v450_v60 }
  0xbb   :  { %372 = vst.msk [vmem:[#allocation3 + $0x60] sm:$0xff] %vm31_vm0, %v355_v61  ;;  %v565_v10 = vmul.f32 0.125, %v549_v2  ;;  %v1388_v11 = vpop.eup %1387  ;;  %v431_v13 = vpop.xlane.xlu0 %430 }
  0xbc   :  { %v338_v14 = vpop.xlane.xlu1 %337  ;;  %v658_v16 = vadd.f32 1e-05, %v642_v3  ;;  %v627_v17 = vsub.f32 %v595_v8, %v611_v63  ;;  %v451_v18 = vadd.f32 %v431_v13, %v387_v57  ;;  %859 = vperm.xlu1 %1380, %v1388_v11  }
  0xbd   :  { %v356_v19 = vadd.f32 %v338_v14, %v308_v1  ;;  %776 = vperm.xlu0 %1379, %v565_v10   ;;  %v580_v25 = vld [vmem:[#allocation4 + $0x48] sm:$0xff]  ;;  %v613_v40 = vmul.f32 %v565_v10, %v565_v10 }
  0xbe   :  { %v550_v21 = vld [vmem:[#allocation3 + $0x58] sm:$0xff]  ;;  %1395 = vrsqrt.f32 %v658_v16  ;;  %v643_v29 = vmax.f32 %v627_v17, 0.0  ;;  %v596_v30 = vmul.f32 0.125, %v580_v25  ;;  %467 = vst.msk [vmem:[#allocation4 + $0x58] sm:$0xff] %vm31_vm0, %v451_v18 }
  0xbf   :  { %373 = vst.msk [vmem:[#allocation3 + $0x68] sm:$0xff] %vm31_vm0, %v356_v19  ;;  %v566_v31 = vmul.f32 0.125, %v550_v21  ;;  %v1390_v5 = vpop.eup %1389  ;;  %v433_v22 = vpop.xlane.xlu0 %432 }
  0xc0   :  { %v340_v32 = vpop.xlane.xlu1 %339  ;;  %v659_v34 = vadd.f32 1e-05, %v643_v29  ;;  %v628_v36 = vsub.f32 %v596_v30, %v612_v26  ;;  %v452_v37 = vadd.f32 %v433_v22, %v388_v23  ;;  %864 = vperm.xlu1 %1380, %v1390_v5  }
  0xc1   :  { %v357_v38 = vadd.f32 %v340_v32, %v309_v28  ;;  %781 = vperm.xlu0 %1379, %v566_v31   ;;  %v581_v33 = vld [vmem:[#allocation4 + $0x50] sm:$0xff]  ;;  %v614_v52 = vmul.f32 %v566_v31, %v566_v31 }
  0xc2   :  { %v551_v27 = vld [vmem:[#allocation3 + $0x60] sm:$0xff]  ;;  %1397 = vrsqrt.f32 %v659_v34  ;;  %v644_v42 = vmax.f32 %v628_v36, 0.0  ;;  %v597_v43 = vmul.f32 0.125, %v581_v33  ;;  %468 = vst.msk [vmem:[#allocation4 + $0x60] sm:$0xff] %vm31_vm0, %v452_v37 }
  0xc3   :  { %374 = vst.msk [vmem:[#allocation3 + $0x70] sm:$0xff] %vm31_vm0, %v357_v38  ;;  %v567_v44 = vmul.f32 0.125, %v551_v27  ;;  %v1392_v45 = vpop.eup %1391  ;;  %v435_v46 = vpop.xlane.xlu0 %434 }
  0xc4   :  { %v342_v20 = vpop.xlane.xlu1 %341  ;;  %v660_v48 = vadd.f32 1e-05, %v644_v42  ;;  %v629_v49 = vsub.f32 %v597_v43, %v613_v40  ;;  %v453_v50 = vadd.f32 %v435_v46, %v389_v39  ;;  %869 = vperm.xlu1 %1380, %v1392_v45   ;;  %v683_v42 = vld [vmem:[#allocation5] sm:$0x1]  ;;  %v685_v43 = vld [vmem:[#allocation6] sm:$0x1] }
  0xc5   :  { %v358_v51 = vadd.f32 %v342_v20, %v310_v41  ;;  %786 = vperm.xlu0 %1379, %v567_v44   ;;  %v582_v9 = vld [vmem:[#allocation4 + $0x58] sm:$0xff]  ;;  %v615_v47 = vmul.f32 %v567_v44, %v567_v44  ;;  %v684_v44 = vmul.f32 0.125, %v683_v42  ;;  %v686_v46 = vmul.f32 0.125, %v685_v43 }
  0xc6   :  { %v552_v4 = vld [vmem:[#allocation3 + $0x68] sm:$0xff]  ;;  %1399 = vrsqrt.f32 %v660_v48  ;;  %v645_v7 = vmax.f32 %v629_v49, 0.0  ;;  %v598_v0 = vmul.f32 0.125, %v582_v9  ;;  %469 = vst.msk [vmem:[#allocation4 + $0x68] sm:$0xff] %vm31_vm0, %v453_v50 }
  0xc7   :  { %375 = vst.msk [vmem:[#allocation3 + $0x78] sm:$0xff] %vm31_vm0, %v358_v51  ;;  %v568_v6 = vmul.f32 0.125, %v552_v4  ;;  %v1394_v12 = vpop.eup %1393  ;;  %v437_v54 = vpop.xlane.xlu0 %436  ;;  %v687_v45 = vmul.f32 %v684_v44, %v684_v44  ;;  %v805_v51 = vlaneseq }
  0xc8   :  { %v439_v24 = vpop.xlane.xlu1 %438  ;;  %v661_v55 = vadd.f32 1e-05, %v645_v7  ;;  %v630_v56 = vsub.f32 %v598_v0, %v614_v52  ;;  %v454_v58 = vadd.f32 %v437_v54, %v390_v15  ;;  %874 = vperm.xlu1 %1380, %v1394_v12  }
  0xc9   :  { %v455_v35 = vadd.f32 %v439_v24, %v391_v53  ;;  %791 = vperm.xlu0 %1379, %v568_v6   ;;  %v583_v59 = vld [vmem:[#allocation4 + $0x60] sm:$0xff]  ;;  %v616_v8 = vmul.f32 %v568_v6, %v568_v6  ;;  %v688_v20 = vsub.f32 %v686_v46, %v687_v45  ;;  %v1757_v9 = vshrl.u32 %v805_v51, 7 }
  0xca   :  { %v553_v60 = vld [vmem:[#allocation3 + $0x70] sm:$0xff]  ;;  %1401 = vrsqrt.f32 %v661_v55  ;;  %v646_v61 = vmax.f32 %v630_v56, 0.0  ;;  %v599_v57 = vmul.f32 0.125, %v583_v59  ;;  %470 = vst.msk [vmem:[#allocation4 + $0x70] sm:$0xff] %vm31_vm0, %v454_v58 }
  0xcb   :  { %471 = vst.msk [vmem:[#allocation4 + $0x78] sm:$0xff] %vm31_vm0, %v455_v35  ;;  %v569_v62 = vmul.f32 0.125, %v553_v60  ;;  %v1396_v63 = vpop.eup %1395  ;;  %v689_v48 = vmax.f32 %v688_v20, 0.0  ;;  %v807_v53 = vsub.s32 0, %v1757_v9  ;;  %vm1226_vm5 = vcmp.eq.s32.totalorder %v1757_v9, 0 }
  0xcc   :  { %v662_v1 = vadd.f32 1e-05, %v646_v61  ;;  %v631_v2 = vsub.f32 %v599_v57, %v615_v47  ;;  %879 = vperm.xlu1 %1380, %v1396_v63  }
  0xcd   :  { %796 = vperm.xlu0 %1379, %v569_v62   ;;  %v584_v3 = vld [vmem:[#allocation4 + $0x68] sm:$0xff]  ;;  %v617_v25 = vmul.f32 %v569_v62, %v569_v62  ;;  %v690_v49 = vadd.f32 1e-05, %v689_v48  ;;  %v1762_v12 = vrot.slane %v684_v44, %v807_v53 }
  0xce   :  { %v554_v10 = vld [vmem:[#allocation3 + $0x78] sm:$0xff]  ;;  %1403 = vrsqrt.f32 %v662_v1  ;;  %v647_v11 = vmax.f32 %v631_v2, 0.0  ;;  %v600_v13 = vmul.f32 0.125, %v584_v3 }
  0xcf   :  { %v570_v14 = vmul.f32 0.125, %v554_v10  ;;  %v1398_v16 = vpop.eup %1397 }
  0xd0   :  { %v663_v17 = vadd.f32 1e-05, %v647_v11  ;;  %v632_v18 = vsub.f32 %v600_v13, %v616_v8  ;;  %884 = vperm.xlu1 %1380, %v1398_v16  }
  0xd1   :  { %801 = vperm.xlu0 %1379, %v570_v14   ;;  %v618_v19 = vmul.f32 %v570_v14, %v570_v14  ;;  %v585_v23 = vld [vmem:[#allocation4 + $0x70] sm:$0xff] }
  0xd2   :  { %v586_v26 = vld [vmem:[#allocation4 + $0x78] sm:$0xff]  ;;  %1405 = vrsqrt.f32 %v663_v17  ;;  %v648_v28 = vmax.f32 %v632_v18, 0.0  ;;  %v601_v21 = vmul.f32 0.125, %v585_v23 }
  0xd3   :  { %v602_v29 = vmul.f32 0.125, %v586_v26  ;;  %v1400_v30 = vpop.eup %1399 }
  0xd4   :  { %v664_v31 = vadd.f32 1e-05, %v648_v28  ;;  %v633_v5 = vsub.f32 %v601_v21, %v617_v25  ;;  %889 = vperm.xlu1 %1380, %v1400_v30  }
  0xd5   :  { %v634_v22 = vsub.f32 %v602_v29, %v618_v19 }
  0xd6   :  { %1407 = vrsqrt.f32 %v664_v31  ;;  %v649_v32 = vmax.f32 %v633_v5, 0.0  ;;  %v1035_v5 = vadd.s32 8, %v1757_v9 }
  0xd7   :  { %v650_v34 = vmax.f32 %v634_v22, 0.0  ;;  %v1402_v36 = vpop.eup %1401 }
  0xd8   :  { %v665_v37 = vadd.f32 1e-05, %v649_v32  ;;  %894 = vperm.xlu1 %1380, %v1402_v36  }
  0xd9   :  { %v666_v38 = vadd.f32 1e-05, %v650_v34 }
  0xda   :  { %1409 = vrsqrt.f32 %v665_v37  ;;  %v1788_v37 = vand.u32 127, %v805_v51 }
  0xdb   :  { %v1404_v39 = vpop.eup %1403  ;;  %1411 = vrsqrt.f32 %v666_v38 }
  0xdc   :  { %899 = vperm.xlu1 %1380, %v1404_v39   ;;  %1413 = vrsqrt.f32 %v690_v49  ;;  %vm1074_vm1 = vcmp.eq.s32.totalorder %v1035_v5, %v1788_v37  ;;  %vm1073_vm2 = vcmp.eq.s32.totalorder %v1757_v9, %v1788_v37  ;;  %vm1227_vm6 = vcmp.eq.s32.totalorder %v1788_v37, 0 }
  0xdd   :  { %vm1228_vm7 = vmand %vm1226_vm5, %vm1227_vm6 }
  0xdf   :  { %v1406_v33 = vpop.eup %1405 }
  0xe0   :  { %904 = vperm.xlu1 %1380, %v1406_v33   ;;  %v1036_v33 = vadd.s32 16, %v1757_v9 }
  0xe2   :  { %vm1075_vm3 = vcmp.eq.s32.totalorder %v1036_v33, %v1788_v37 }
  0xe3   :  { %v1408_v40 = vpop.eup %1407 }
  0xe4   :  { %909 = vperm.xlu1 %1380, %v1408_v40  }
  0xe7   :  { %v1410_v41 = vpop.eup %1409 }
  0xe8   :  { %v1412_v27 = vpop.eup %1411  ;;  %914 = vperm.xlu1 %1380, %v1410_v41  }
  0xe9   :  { %919 = vperm.xlu0 %1379, %v1412_v27   ;;  %v1414_v6 = vpop.eup %1413 }
  0xea   :  { %v1768_v56 = vrot.slane %v1414_v6, %v807_v53 }
  0xf1   :  { %v1319_v7 = vpop.f32.mrf.mxu0 }
  0xf2   :  { %v709_v60 = vmul.f32 0.125, %v1319_v7 }
  0xf3   :  { %v184_v54 = vpop.f32.mrf.mxu0 }
  0xf4   :  { %v708_v35 = vmul.f32 0.125, %v184_v54 }
  0xf5   :  { %v1322_v59 = vpop.f32.mrf.mxu0 }
  0xf6   :  { %v711_v19 = vmul.f32 0.125, %v1322_v59 }
  0xf7   :  { %v194_v63 = vpop.f32.mrf.mxu0 }
  0xf8   :  { %v710_v13 = vmul.f32 0.125, %v194_v63 }
  0xf9   :  { %v1325_v53 = vpop.f32.mrf.mxu0 }
 0x113   :  { %v727_v52 = vpop.permute.xlu0 %726 }
 0x114   :  { %v810_v58 = vmul.f32 %v1762_v12, %v727_v52 }
 0x116   :  { %v826_v62 = vsub.f32 %v708_v35, %v810_v58 }
 0x117   :  { %v732_v50 = vpop.permute.xlu1 %731 }
 0x118   :  { %v811_v61 = vmul.f32 %v1762_v12, %v732_v50  ;;  %v1037_v50 = vadd.s32 24, %v1757_v9 }
 0x11a   :  { %v827_v8 = vsub.f32 %v709_v60, %v811_v61  ;;  %vm1076_vm4 = vcmp.eq.s32.totalorder %v1037_v50, %v1788_v37  ;;  %v204_v60 = vpop.f32.mrf.mxu0 }
 0x11b   :  { %v737_v15 = vpop.permute.xlu1 %736 }
 0x11c   :  { %v812_v11 = vmul.f32 %v1762_v12, %v737_v15 }
 0x11e   :  { %v828_v21 = vsub.f32 %v710_v13, %v812_v11  ;;  %v712_v11 = vmul.f32 0.125, %v204_v60 }
 0x11f   :  { %v742_v4 = vpop.permute.xlu1 %741 }
 0x120   :  { %v813_v23 = vmul.f32 %v1762_v12, %v742_v4 }
 0x122   :  { %v829_v38 = vsub.f32 %v711_v19, %v813_v23 }
 0x123   :  { %v1760_v0 = vpop.permute.xlu0 %751  ;;  %v1764_v24 = vpop.permute.xlu1 %746 }
 0x127   :  { %v1766_v55 = vpop.permute.xlu0 %756 }
 0x12b   :  { %v845_v47 = vpop.permute.xlu1 %844  ;;  %v1773_v1 = vpop.permute.xlu0 %761 }
 0x12c   :  { %v928_v57 = vmul.f32 %v1768_v56, %v845_v47 }
 0x12e   :  { %v944_v2 = vmul.f32 %v928_v57, %v826_v62  ;;  %v1331_v62 = vpop.f32.mrf.mxu1 }
 0x12f   :  { %v850_v3 = vpop.permute.xlu1 %849  ;;  %v1780_v25 = vpop.permute.xlu0 %766 }
 0x130   :  { %v929_v10 = vmul.f32 %v1768_v56, %v850_v3  ;;  %v1777_v16 = vmul.f32 %v944_v2, %v944_v2  ;;  %v1237_v17 = vadd.f32 -1.0, %v944_v2  ;;  %v1328_v2 = vpop.f32.mrf.mxu0  ;;  %v224_v13 = vpop.f32.mrf.mxu1 }
 0x132   :  { %v945_v14 = vmul.f32 %v929_v10, %v827_v8  ;;  %v1137_v22 = vmul.f32 %v1237_v17, %v1237_v17  ;;  %v1153_v32 = vmul.f32 0.005, %v1777_v16  ;;  %v814_v10 = vmul.f32 %v1762_v12, %v1764_v24  ;;  %v1334_v19 = vpop.f32.mrf.mxu1 }
 0x133   :  { %v855_v18 = vpop.permute.xlu1 %854  ;;  %v1794_v42 = vpop.permute.xlu0 %771  ;;  %v713_v17 = vmul.f32 0.125, %v1325_v53  ;;  %v715_v24 = vmul.f32 0.125, %v1328_v2 }
 0x134   :  { %v1782_v26 = vmul.f32 %v945_v14, %v945_v14  ;;  %v1238_v28 = vadd.f32 -1.0, %v945_v14  ;;  %v930_v29 = vmul.f32 %v1768_v56, %v855_v18  ;;  %v1169_v44 = vsub.f32 %v1137_v22, %v1153_v32  ;;  %v214_v14 = vpop.f32.mrf.mxu0 }
 0x135   :  { %v815_v18 = vmul.f32 %v1762_v12, %v1760_v0  ;;  %v817_v22 = vmul.f32 %v1762_v12, %v1773_v1  ;;  %v717_v1 = vmul.f32 0.125, %v1331_v62 }
 0x136   :  { %v1138_v30 = vmul.f32 %v1238_v28, %v1238_v28  ;;  %v1154_v31 = vmul.f32 0.005, %v1782_v26  ;;  %v946_v34 = vmul.f32 %v930_v29, %v828_v21  ;;  %v1185_v6 = vsel %vm1073_vm2, %v1169_v44, 0.0 }
 0x137   :  { %v860_v36 = vpop.permute.xlu1 %859  ;;  %v830_v21 = vsub.f32 %v712_v11, %v814_v10  ;;  %v816_v29 = vmul.f32 %v1762_v12, %v1766_v55  ;;  %v831_v32 = vsub.f32 %v713_v17, %v815_v18  ;;  %v1008_v55 = vadd.f32 %v1782_v26, %v1777_v16 }
 0x138   :  { %v931_v39 = vmul.f32 %v1768_v56, %v860_v36  ;;  %v1170_v40 = vsub.f32 %v1138_v30, %v1154_v31  ;;  %v1792_v41 = vmul.f32 %v946_v34, %v946_v34  ;;  %v1239_v27 = vadd.f32 -1.0, %v946_v34  ;;  %v777_v58 = vpop.permute.xlu0 %776  ;;  %v234_v34 = vpop.f32.mrf.mxu1 }
 0x139   :  { %v714_v30 = vmul.f32 0.125, %v214_v14  ;;  %v820_v16 = vmul.f32 %v1762_v12, %v777_v58 }
 0x13a   :  { %v947_v43 = vmul.f32 %v931_v39, %v829_v38  ;;  %v1139_v45 = vmul.f32 %v1239_v27, %v1239_v27  ;;  %v1155_v46 = vmul.f32 0.005, %v1792_v41  ;;  %v1186_v15 = vsel %vm1074_vm1, %v1170_v40, 0.0  ;;  %v1337_v27 = vpop.f32.mrf.mxu1 }
 0x13b   :  { %v865_v20 = vpop.permute.xlu1 %864  ;;  %v1201_v35 = vadd.f32 %v1186_v15, %v1185_v6  ;;  %v818_v38 = vmul.f32 %v1762_v12, %v1780_v25  ;;  %v716_v39 = vmul.f32 0.125, %v224_v13  ;;  %v832_v40 = vsub.f32 %v714_v30, %v816_v29 }
 0x13c   :  { %v1800_v48 = vmul.f32 %v947_v43, %v947_v43  ;;  %v1240_v49 = vadd.f32 -1.0, %v947_v43  ;;  %v1171_v51 = vsub.f32 %v1139_v45, %v1155_v46  ;;  %v782_v3 = vpop.permute.xlu0 %781  ;;  %v932_v23 = vmul.f32 %v1768_v56, %v865_v20 }
 0x13d   :  { %v833_v45 = vsub.f32 %v715_v24, %v817_v22  ;;  %v819_v46 = vmul.f32 %v1762_v12, %v1794_v42  ;;  %v1009_v20 = vadd.f32 %v1008_v55, %v1792_v41  ;;  %v834_v15 = vsub.f32 %v716_v39, %v818_v38 }
 0x13e   :  { %v1140_v52 = vmul.f32 %v1240_v49, %v1240_v49  ;;  %v1156_v7 = vmul.f32 0.005, %v1800_v48  ;;  %v1187_v54 = vsel %vm1075_vm3, %v1171_v51, 0.0  ;;  %v948_v36 = vmul.f32 %v932_v23, %v830_v21 }
 0x13f   :  { %v870_v4 = vpop.permute.xlu1 %869  ;;  %v1202_v47 = vadd.f32 %v1201_v35, %v1187_v54  ;;  %v1010_v53 = vadd.f32 %v1009_v20, %v1800_v48  ;;  %v835_v42 = vsub.f32 %v717_v1, %v819_v46  ;;  %v719_v35 = vmul.f32 0.125, %v1334_v19 }
 0x140   :  { %v1172_v59 = vsub.f32 %v1140_v52, %v1156_v7  ;;  %v787_v31 = vpop.permute.xlu0 %786  ;;  %v933_v5 = vmul.f32 %v1768_v56, %v870_v4  ;;  %v996_v49 = vmul.f32 %v948_v36, %v948_v36  ;;  %v718_v52 = vmul.f32 0.125, %v234_v34  ;;  %v244_v4 = vpop.f32.mrf.mxu1 }
 0x141   :  { %v821_v41 = vmul.f32 %v1762_v12, %v782_v3  ;;  %v720_v62 = vmul.f32 0.125, %v244_v4  ;;  %v822_v58 = vmul.f32 %v1762_v12, %v787_v31  ;;  %v721_v19 = vmul.f32 0.125, %v1337_v27 }
 0x142   :  { %v1188_v57 = vsel %vm1076_vm4, %v1172_v59, 0.0  ;;  %v949_v43 = vmul.f32 %v933_v5, %v831_v32  ;;  %v1011_v59 = vadd.f32 %v1010_v53, %v996_v49  ;;  %v1340_v2 = vpop.f32.mrf.mxu1 }
 0x143   :  { %v875_v61 = vpop.permute.xlu1 %874  ;;  %v1203_v63 = vadd.f32 %v1202_v47, %v1188_v57  ;;  %v836_v57 = vsub.f32 %v718_v52, %v820_v16  ;;  %v837_v14 = vsub.f32 %v719_v35, %v821_v41  ;;  %v838_v23 = vsub.f32 %v720_v62, %v822_v58 }
 0x144   :  { %v934_v0 = vmul.f32 %v1768_v56, %v875_v61  ;;  %v792_v50 = vpop.permute.xlu0 %791  ;;  %v997_v7 = vmul.f32 %v949_v43, %v949_v43  ;;  %v254_v29 = vpop.f32.mrf.mxu1  ;;  %v723_v43 = vmul.f32 0.125, %v1340_v2 }
 0x145   :  { %1216 = vadd.xlane.f32.xlu0 %v1203_v63  ;;  %v722_v38 = vmul.f32 0.125, %v254_v29 }
 0x146   :  { %v950_v25 = vmul.f32 %v934_v0, %v832_v40  ;;  %v1012_v48 = vadd.f32 %v1011_v59, %v997_v7 }
 0x147   :  { %v880_v8 = vpop.permute.xlu1 %879 }
 0x148   :  { %v935_v44 = vmul.f32 %v1768_v56, %v880_v8  ;;  %v998_v47 = vmul.f32 %v950_v25, %v950_v25  ;;  %v797_v8 = vpop.permute.xlu0 %796 }
 0x14a   :  { %v951_v6 = vmul.f32 %v935_v44, %v833_v45  ;;  %v1013_v17 = vadd.f32 %v1012_v48, %v998_v47 }
 0x14b   :  { %v885_v28 = vpop.permute.xlu1 %884 }
 0x14c   :  { %v936_v51 = vmul.f32 %v1768_v56, %v885_v28  ;;  %v999_v10 = vmul.f32 %v951_v6, %v951_v6  ;;  %v823_v28 = vmul.f32 %v1762_v12, %v792_v50  ;;  %v802_v22 = vpop.permute.xlu0 %801 }
 0x14d   :  { %v825_v44 = vmul.f32 %v1762_v12, %v802_v22 }
 0x14e   :  { %v952_v60 = vmul.f32 %v936_v51, %v834_v15  ;;  %v1014_v30 = vadd.f32 %v1013_v17, %v999_v10  ;;  %v839_v0 = vsub.f32 %v721_v19, %v823_v28 }
 0x14f   :  { %v890_v33 = vpop.permute.xlu1 %889  ;;  %v841_v52 = vsub.f32 %v723_v43, %v825_v44 }
 0x150   :  { %v937_v54 = vmul.f32 %v1768_v56, %v890_v33  ;;  %v1000_v3 = vmul.f32 %v952_v60, %v952_v60  ;;  %v824_v33 = vmul.f32 %v1762_v12, %v797_v8 }
 0x152   :  { %v953_v11 = vmul.f32 %v937_v54, %v835_v42  ;;  %v1015_v32 = vadd.f32 %v1014_v30, %v1000_v3  ;;  %v840_v49 = vsub.f32 %v722_v38, %v824_v33 }
 0x153   :  { %v895_v26 = vpop.permute.xlu1 %894 }
 0x154   :  { %v938_v61 = vmul.f32 %v1768_v56, %v895_v26  ;;  %v1001_v31 = vmul.f32 %v953_v11, %v953_v11 }
 0x156   :  { %v954_v18 = vmul.f32 %v938_v61, %v836_v57  ;;  %v1016_v40 = vadd.f32 %v1015_v32, %v1001_v31 }
 0x157   :  { %v900_v63 = vpop.permute.xlu1 %899 }
 0x158   :  { %v939_v13 = vmul.f32 %v1768_v56, %v900_v63  ;;  %v1002_v34 = vmul.f32 %v954_v18, %v954_v18 }
 0x15a   :  { %v955_v5 = vmul.f32 %v939_v13, %v837_v14  ;;  %v1017_v45 = vadd.f32 %v1016_v40, %v1002_v34 }
 0x15b   :  { %v905_v21 = vpop.permute.xlu1 %904 }
 0x15c   :  { %v940_v24 = vmul.f32 %v1768_v56, %v905_v21  ;;  %v1003_v55 = vmul.f32 %v955_v5, %v955_v5 }
 0x15e   :  { %v956_v36 = vmul.f32 %v940_v24, %v838_v23  ;;  %v1018_v50 = vadd.f32 %v1017_v45, %v1003_v55 }
 0x15f   :  { %v910_v39 = vpop.permute.xlu1 %909 }
 0x160   :  { %v941_v27 = vmul.f32 %v1768_v56, %v910_v39  ;;  %v1004_v1 = vmul.f32 %v956_v36, %v956_v36 }
 0x162   :  { %v957_v46 = vmul.f32 %v941_v27, %v839_v0  ;;  %v1019_v26 = vadd.f32 %v1018_v50, %v1004_v1 }
 0x163   :  { %v915_v20 = vpop.permute.xlu1 %914 }
 0x164   :  { %v1005_v25 = vmul.f32 %v957_v46, %v957_v46  ;;  %v920_v51 = vpop.permute.xlu0 %919  ;;  %v942_v15 = vmul.f32 %v1768_v56, %v915_v20 }
 0x165   :  { %v943_v16 = vmul.f32 %v1768_v56, %v920_v51 }
 0x166   :  { %v958_v53 = vmul.f32 %v942_v15, %v840_v49  ;;  %v1020_v7 = vadd.f32 %v1019_v26, %v1005_v25 }
 0x167   :  { %v959_v4 = vmul.f32 %v943_v16, %v841_v52 }
 0x168   :  { %v1006_v6 = vmul.f32 %v958_v53, %v958_v53 }
 0x169   :  { %v1007_v54 = vmul.f32 %v959_v4, %v959_v4 }
 0x16a   :  { %v1021_v12 = vadd.f32 %v1020_v7, %v1006_v6 }
 0x16c   :  { %v1022_v42 = vadd.f32 %v1021_v12, %v1007_v54 }
 0x16e   :  { %1023 = vadd.xlane.f32.xlu1 %v1022_v42 }
 0x1ce   :  { %v1217_v35 = vpop.xlane.xlu0 %1216 }
 0x1cf   :  { %v1218_v41 = vrot.slane %v1217_v35, 4 }
 0x1d1   :  { %v1219_v59 = vadd.f32 %v1218_v41, %v1217_v35 }
 0x1d3   :  { %v1220_v47 = vrot.slane %v1219_v59, 2 }
 0x1d5   :  { %v1221_v62 = vadd.f32 %v1220_v47, %v1219_v59 }
 0x1d7   :  { %v1222_v56 = vrot.slane %v1221_v62, 1 }
 0x1d9   :  { %v1223_v8 = vadd.f32 %v1222_v56, %v1221_v62 }
 0x1f7   :  { %v1024_v60 = vpop.xlane.xlu1 %1023 }
 0x1f8   :  { %v1025_v61 = vrot.slane %v1024_v60, 4 }
 0x1fa   :  { %v1026_v57 = vadd.f32 %v1025_v61, %v1024_v60 }
 0x1fc   :  { %v1027_v58 = vrot.slane %v1026_v57, 2 }
 0x1fe   :  { %v1028_v63 = vadd.f32 %v1027_v58, %v1026_v57 }
 0x200   :  { %v1029_v48 = vrot.slane %v1028_v63, 1 }
 0x202   :  { %v1030_v2 = vadd.f32 %v1029_v48, %v1028_v63 }
 0x204   :  { %1373 = vpush %v1030_v2 }
 0x205   :  { %1375 = vpush %v1223_v8 }
 0x235   :  { %s1374_s0 = spop %1373 }
 0x236   :  { %s1032_s16 = smul.f32 0.005, %s1374_s0  ;;  %s1376_s17 = spop %1375 }
 0x238   :  { %s1225_s18 = sadd.f32 %s1376_s17, %s1032_s16 }
 0x23a   :  { %v1229_v10 = vstv %s1225_s18 }
 0x23b   :  { %v1230_v11 = vsel %vm1228_vm7, %v1229_v10, 0.0 }
 0x23c   :  { %1231 = vst [vmem:[%s1847_s2] sm:$0xff] %v1230_v11 }

</bundles_post_ra>
